<compile_context>
chip_gen: v7x
topology: tpu7x:2x2x1
jax: 0.10.0
libtpu: 0.0.40
codegen_flags: <defaults>
</compile_context>

<pallas_src>
import math

import jax
import jax.numpy as jnp
from jax import lax
from jax.experimental import pallas as pl
from jax.experimental.pallas import tpu as pltpu

EPS = 1e-8
LANE = 128            # TPU lane width: channel dims are padded to a multiple of this
ROW_TILE_MAX = 4096   # cap on flattened rows per grid step (keeps VMEM small on v7x)


def _round_up(x, m):
    return ((x + m - 1) // m) * m


def _pad_axis(x, axis, new_size):
    if x.shape[axis] == new_size:
        return x
    cfg = [(0, 0)] * x.ndim
    cfg[axis] = (0, new_size - x.shape[axis])
    return jnp.pad(x, cfg)


# ----------------------------------------------------------------------------
# Pallas kernel: modulated/demodulated conv (+ rank-1 noise + leaky_relu)
# ----------------------------------------------------------------------------
def conv2d_mod(x, style, weight, *, demod, noise_map=None, noise_w=None,
               noise_b=None, act=False, out_dtype=jnp.bfloat16, row_tile=None):
    """Conv2DMod.forward (+ noise add + leaky_relu) as one Pallas TPU kernel.

    x         : (B, H, W, Cp)    bf16 NHWC activations, channels padded to LANE
    style     : (B, Cin)         f32 (true, unpadded input channel count)
    weight    : (Cout, Cin, k, k) f32, k in {1, 3}
    noise_map : (B, H, W) f32 or None; the added noise is
                noise_map[b,h,w] * noise_w[c] + noise_b[c]
    returns   : (B, H, W, Coutp) out_dtype with Coutp = round_up(Cout, 128);
                channels >= Cout are exactly zero.
    """
    B, H, W, Cp = x.shape
    Cout, Cin, k, _ = weight.shape
    assert Cp % LANE == 0 and Cp >= Cin
    assert k in (1, 3)
    Coutp = _round_up(Cout, LANE)
    kk = k * k
    has_noise = noise_map is not None

    # batch-invariant weight, tap-major (ky, kx, ci) -> (kk, Cp, Coutp), bf16
    w = jnp.transpose(weight, (2, 3, 1, 0)).reshape(kk, Cin, Cout)
    w = _pad_axis(_pad_axis(w, 1, Cp), 2, Coutp).astype(jnp.bfloat16)

    # style modulation folded into the activations: x * (s + 1)
    s1p = _pad_axis(style + 1.0, 1, Cp).astype(jnp.bfloat16).reshape(B, 1, Cp)

    # demodulation as a per-(batch, Cout) post-scale (tiny JAX matmul)
    if demod:
        w2sum = jnp.sum(jnp.square(weight.astype(jnp.float32)), axis=(2, 3)).T  # (Cin, Cout)
        d = lax.rsqrt(jnp.square(style + 1.0) @ w2sum + EPS)                    # (B, Cout)
        d = _pad_axis(d, 1, Coutp).reshape(B, 1, Coutp).astype(jnp.float32)

    # flatten spatial into padded rows (stride S) so each of the k*k taps is a
    # static row shift of a single 2-D block (no im2col).
    if k == 3:
        S = W + 2
        xp = jnp.pad(x, ((0, 0), (1, 1), (1, 1), (0, 0)))           # (B, H+2, S, Cp)
        shifts = [ky * S + kx for ky in range(3) for kx in range(3)]
    else:  # k == 1
        S = W
        xp = x
        shifts = [0]
    HS = H * S
    halo = max(shifts)

    if row_tile is None:
        row_tile = min(ROW_TILE_MAX, max(512, 8 * S))
    TM = _round_up(min(HS, row_tile), 8)
    nM = -(-HS // TM)
    TIN = TM + halo

    xflat = _pad_axis(xp.reshape(B, xp.shape[1] * S, Cp), 1, nM * TM + halo)
    # Overlapping row tiles: halo duplicated once in HBM (~(1+halo/TM)x bytes).
    # Copy is skipped entirely when there is a single tile or no halo (k==1).
    # TODO(synk): a manual-DMA halo pipeline (pl.ANY + make_async_copy) would
    # remove even this duplication for very large images.
    if nM == 1:
        x_tiles = xflat[:, None, :, :]
    elif halo == 0:
        x_tiles = xflat.reshape(B, nM, TM, Cp)
    else:
        x_tiles = jnp.stack([xflat[:, m * TM:m * TM + TIN, :] for m in range(nM)],
                            axis=1)

    if has_noise:
        nz = _pad_axis(_pad_axis(noise_map, 2, S).reshape(B, HS), 1, nM * TM)
        nz = nz.reshape(B, nM, TM, 1).astype(jnp.float32)
        nwp = _pad_axis(noise_w, 0, Coutp).reshape(1, Coutp).astype(jnp.float32)
        nbp = _pad_axis(noise_b, 0, Coutp).reshape(1, Coutp).astype(jnp.float32)

    def kernel(*refs):
        it = iter(refs)
        x_ref, s_ref, w_ref = next(it), next(it), next(it)
        d_ref = next(it) if demod else None
        if has_noise:
            nz_ref, nw_ref, nb_ref = next(it), next(it), next(it)
        o_ref = next(it)

        sb = s_ref[0]                                            # (1, Cp) bf16
        acc = None
        for t, sh in enumerate(shifts):
            xt = x_ref[0, 0, sh:sh + TM, :] * sb                 # (TM, Cp) bf16
            y = jnp.dot(xt, w_ref[t], preferred_element_type=jnp.float32)
            acc = y if acc is None else acc + y                  # f32 accumulate
        out = acc
        if demod:
            out = out * d_ref[0]                                 # per-(b, Cout) post-scale
        if has_noise:
            out = out + nz_ref[0, 0] * nw_ref[...] + nb_ref[...]  # rank-1 noise
        if act:
            out = jnp.where(out >= 0.0, out, 0.2 * out)          # leaky_relu(0.2)
        o_ref[0, 0] = out.astype(o_ref.dtype)

    in_specs = [
        pl.BlockSpec((1, 1, TIN, Cp), lambda b, m: (b, m, 0, 0)),
        pl.BlockSpec((1, 1, Cp), lambda b, m: (b, 0, 0)),
        pl.BlockSpec((kk, Cp, Coutp), lambda b, m: (0, 0, 0)),   # resident weight
    ]
    args = [x_tiles, s1p, w]
    if demod:
        in_specs.append(pl.BlockSpec((1, 1, Coutp), lambda b, m: (b, 0, 0)))
        args.append(d)
    if has_noise:
        in_specs += [
            pl.BlockSpec((1, 1, TM, 1), lambda b, m: (b, m, 0, 0)),
            pl.BlockSpec((1, Coutp), lambda b, m: (0, 0)),
            pl.BlockSpec((1, Coutp), lambda b, m: (0, 0)),
        ]
        args += [nz, nwp, nbp]

    out = pl.pallas_call(
        kernel,
        out_shape=jax.ShapeDtypeStruct((B, nM, TM, Coutp), out_dtype),
        grid=(B, nM),
        in_specs=in_specs,
        out_specs=pl.BlockSpec((1, 1, TM, Coutp), lambda b, m: (b, m, 0, 0)),
        compiler_params=pltpu.CompilerParams(
            dimension_semantics=("parallel", "parallel"),
            vmem_limit_bytes=48 * 1024 * 1024),
    )(*args)

    out = out.reshape(B, nM * TM, Coutp)[:, :HS, :].reshape(B, H, S, Coutp)
    if k == 3:
        out = out[:, :, :W, :]
    return out


# ----------------------------------------------------------------------------
# Gather-free x2 bilinear upsample (PyTorch nn.Upsample, align_corners=False)
# ----------------------------------------------------------------------------
def _upsample_x2_along(x, axis):
    n = x.shape[axis]
    lo = jnp.concatenate([lax.slice_in_dim(x, 0, 1, axis=axis),
                          lax.slice_in_dim(x, 0, n - 1, axis=axis)], axis=axis)
    hi = jnp.concatenate([lax.slice_in_dim(x, 1, n, axis=axis),
                          lax.slice_in_dim(x, n - 1, n, axis=axis)], axis=axis)
    even = 0.25 * lo + 0.75 * x
    odd = 0.75 * x + 0.25 * hi
    out = jnp.stack([even, odd], axis=axis + 1)
    new_shape = list(x.shape)
    new_shape[axis] = 2 * n
    return out.reshape(new_shape)


def upsample_bilinear_x2(x):  # NHWC
    x = _upsample_x2_along(x, 1)
    x = _upsample_x2_along(x, 2)
    return x


# ----------------------------------------------------------------------------
# Parameter init (deterministic, matching PyTorch init distributions)
# ----------------------------------------------------------------------------
def _kaiming_conv(key, out_c, in_c, k):
    fan_in = in_c * k * k
    std = math.sqrt(2.0) / math.sqrt(fan_in)
    return jax.random.normal(key, (out_c, in_c, k, k), jnp.float32) * std


def _linear(key, in_f, out_f):
    kw, kb = jax.random.split(key)
    bound = 1.0 / math.sqrt(in_f)
    w = jax.random.uniform(kw, (in_f, out_f), jnp.float32, -bound, bound)
    b = jax.random.uniform(kb, (out_f,), jnp.float32, -bound, bound)
    return w, b


def init_generator(key, image_size, latent_dim, network_capacity=16):
    num_layers = int(math.log2(image_size) - 1)
    init_channels = 4 * network_capacity
    filters = [init_channels] + [network_capacity * 2 ** (i + 1) for i in range(num_layers)][::-1]
    pairs = list(zip(filters[:-1], filters[1:]))
    keys = jax.random.split(key, 1 + len(pairs))
    params = {
        "initial_block": jax.random.normal(keys[0], (init_channels, 4, 4), jnp.float32),
        "blocks": [],
    }
    for ind, (in_c, out_c) in enumerate(pairs):
        bk = jax.random.split(keys[1 + ind], 8)
        s1w, s1b = _linear(bk[0], latent_dim, in_c)
        n1w, n1b = _linear(bk[1], 1, out_c)
        s2w, s2b = _linear(bk[2], latent_dim, out_c)
        n2w, n2b = _linear(bk[3], 1, out_c)
        rsw, rsb = _linear(bk[4], latent_dim, out_c)
        params["blocks"].append(dict(
            style1_w=s1w, style1_b=s1b, noise1_w=n1w, noise1_b=n1b,
            conv1_w=_kaiming_conv(bk[5], out_c, in_c, 3),
            style2_w=s2w, style2_b=s2b, noise2_w=n2w, noise2_b=n2b,
            conv2_w=_kaiming_conv(bk[6], out_c, out_c, 3),
            rgb_style_w=rsw, rgb_style_b=rsb,
            rgb_conv_w=_kaiming_conv(bk[7], 3, out_c, 1),
            upsample=(ind != 0),
            upsample_rgb=(ind != num_layers - 1),
        ))
    return params


# ----------------------------------------------------------------------------
# Generator forward (Pallas path)
# ----------------------------------------------------------------------------
def generator_block_forward(p, x, prev_rgb, istyle, inoise):
    if p["upsample"]:
        x = upsample_bilinear_x2(x)
    B, H, W, _ = x.shape
    # to_noise(inoise).permute(0,3,2,1) == rank-1 noise with an H/W-transposed map
    nzT = jnp.swapaxes(inoise[:, :H, :W, 0], 1, 2).astype(jnp.float32)   # (B, H, W)

    s1 = istyle @ p["style1_w"] + p["style1_b"]
    x = conv2d_mod(x, s1, p["conv1_w"], demod=True, noise_map=nzT,
                   noise_w=p["noise1_w"][0], noise_b=p["noise1_b"],
                   act=True, out_dtype=jnp.bfloat16)
    s2 = istyle @ p["style2_w"] + p["style2_b"]
    x = conv2d_mod(x, s2, p["conv2_w"], demod=True, noise_map=nzT,
                   noise_w=p["noise2_w"][0], noise_b=p["noise2_b"],
                   act=True, out_dtype=jnp.bfloat16)
    srgb = istyle @ p["rgb_style_w"] + p["rgb_style_b"]
    rgb = conv2d_mod(x, srgb, p["rgb_conv_w"], demod=False,
                     act=False, out_dtype=jnp.float32)
    if prev_rgb is not None:
        rgb = rgb + prev_rgb
    if p["upsample_rgb"]:
        rgb = upsample_bilinear_x2(rgb)
    return x, rgb


def generator_forward(params, styles, input_noise):
    B = styles.shape[0]
    init = params["initial_block"]                              # (C, 4, 4)
    x = jnp.broadcast_to(init[None], (B,) + init.shape)         # NCHW
    x = jnp.transpose(x, (0, 2, 3, 1))                          # NHWC
    x = _pad_axis(x, 3, _round_up(x.shape[3], LANE)).astype(jnp.bfloat16)
    styles_t = jnp.transpose(styles, (1, 0, 2))                 # (num_layers, B, latent)
    rgb = None
    for i, blk in enumerate(params["blocks"]):
        x, rgb = generator_block_forward(blk, x, rgb, styles_t[i], input_noise)
    return jnp.transpose(rgb[:, :, :, :3], (0, 3, 1, 2))        # NCHW (B, 3, H, W)


# ----------------------------------------------------------------------------
# Pure-JAX f32 reference (mirrors the PyTorch module, used for verification)
# ----------------------------------------------------------------------------
def conv2d_mod_ref(x, style, weight, *, demod, noise=None, act=False):
    B, H, W, Cin = x.shape
    Cout, _, k, _ = weight.shape
    w = weight[None] * (style[:, None, :, None, None] + 1.0)          # (B,Cout,Cin,k,k)
    if demod:
        dd = lax.rsqrt(jnp.sum(w * w, axis=(2, 3, 4), keepdims=True) + EPS)
        w = w * dd
    pad = (k - 1) // 2
    xp = jnp.pad(x, ((0, 0), (pad, pad), (pad, pad), (0, 0)))
    out = jnp.zeros((B, H, W, Cout), jnp.float32)
    for ky in range(k):
        for kx in range(k):
            out = out + jnp.einsum('bhwc,boc->bhwo',
                                   xp[:, ky:ky + H, kx:kx + W, :], w[:, :, :, ky, kx])
    if noise is not None:
        out = out + noise
    if act:
        out = jnp.where(out >= 0.0, out, 0.2 * out)
    return out


def generator_block_forward_ref(p, x, prev_rgb, istyle, inoise):
    if p["upsample"]:
        x = upsample_bilinear_x2(x)
    B, H, W, _ = x.shape
    noise_patch = inoise[:, :H, :W, :]
    n1 = jnp.swapaxes(noise_patch * p["noise1_w"][0] + p["noise1_b"], 1, 2)
    n2 = jnp.swapaxes(noise_patch * p["noise2_w"][0] + p["noise2_b"], 1, 2)
    s1 = istyle @ p["style1_w"] + p["style1_b"]
    x = conv2d_mod_ref(x, s1, p["conv1_w"], demod=True, noise=n1, act=True)
    s2 = istyle @ p["style2_w"] + p["style2_b"]
    x = conv2d_mod_ref(x, s2, p["conv2_w"], demod=True, noise=n2, act=True)
    srgb = istyle @ p["rgb_style_w"] + p["rgb_style_b"]
    rgb = conv2d_mod_ref(x, srgb, p["rgb_conv_w"], demod=False)
    if prev_rgb is not None:
        rgb = rgb + prev_rgb
    if p["upsample_rgb"]:
        rgb = upsample_bilinear_x2(rgb)
    return x, rgb


def generator_forward_ref(params, styles, input_noise):
    B = styles.shape[0]
    init = params["initial_block"]
    x = jnp.transpose(jnp.broadcast_to(init[None], (B,) + init.shape), (0, 2, 3, 1))
    styles_t = jnp.transpose(styles, (1, 0, 2))
    rgb = None
    for i, blk in enumerate(params["blocks"]):
        x, rgb = generator_block_forward_ref(blk, x, rgb, styles_t[i], input_noise)
    return jnp.transpose(rgb, (0, 3, 1, 2))


# ----------------------------------------------------------------------------
if __name__ == "__main__":
    image_size = 16
    latent_dim = 16
    network_capacity = 4
    batch = 2
    num_layers = int(math.log2(image_size) - 1)

    root = jax.random.PRNGKey(0)
    kp, ks, kn, ku = jax.random.split(root, 4)
    params = init_generator(kp, image_size, latent_dim, network_capacity)

    styles = jax.random.normal(ks, (batch, num_layers, latent_dim), jnp.float32)
    input_noise = jax.random.uniform(kn, (batch, image_size, image_size, 1), jnp.float32)

    # --- unit check: tiled / halo'd Pallas modconv vs plain-JAX reference -----
    k1, k2, k3, k4, k5 = jax.random.split(ku, 5)
    B0, H0, W0, Ci0, Co0 = 2, 16, 16, 16, 8
    x0 = jax.random.normal(k1, (B0, H0, W0, Ci0), jnp.float32)
    s0 = 0.2 * jax.random.normal(k2, (B0, Ci0), jnp.float32)
    w0 = 0.3 * jax.random.normal(k3, (Co0, Ci0, 3, 3), jnp.float32)
    nm0 = jax.random.normal(k4, (B0, H0, W0), jnp.float32)
    nw0 = 0.1 * jax.random.normal(k5, (Co0,), jnp.float32)
    nb0 = 0.05 * jnp.ones((Co0,), jnp.float32)

    x0p = _pad_axis(x0, 3, _round_up(Ci0, LANE)).astype(jnp.bfloat16)
    got = conv2d_mod(x0p, s0, w0, demod=True, noise_map=nm0, noise_w=nw0,
                     noise_b=nb0, act=True, out_dtype=jnp.float32,
                     row_tile=64)[:, :, :, :Co0]     # row_tile=64 -> 5 row tiles + halo
    ref = conv2d_mod_ref(x0p[..., :Ci0].astype(jnp.float32), s0, w0, demod=True,
                         noise=nm0[..., None] * nw0 + nb0, act=True)
    got, ref = jax.block_until_ready((got, ref))
    uerr = float(jnp.max(jnp.abs(got - ref))) / (float(jnp.max(jnp.abs(ref))) + 1e-6)
    assert uerr < 5e-2, f"modconv kernel mismatch: rel err {uerr}"

    # --- full generator forward (Pallas) vs plain-JAX f32 reference -----------
    gen = jax.jit(lambda s, n: generator_forward(params, s, n))
    rgb = jax.block_until_ready(gen(styles, input_noise))
    assert rgb.shape == (batch, 3, image_size, image_size), rgb.shape
    assert bool(jnp.all(jnp.isfinite(rgb)))

    rgb_ref = jax.block_until_ready(generator_forward_ref(params, styles, input_noise))
    gerr = float(jnp.max(jnp.abs(rgb - rgb_ref))) / (float(jnp.max(jnp.abs(rgb_ref))) + 1e-6)
    assert gerr < 1e-1, f"generator output mismatch vs reference: rel err {gerr}"

    print("KERNEL_OK")
</pallas_src>

<mosaic_0001>
module attributes {stable_mosaic.version = 11 : i64} {
  func.func @kernel(%arg0: i32, %arg1: i32, %arg2: memref<1x1x102x128xbf16, #tpu.memory_space<vmem>>, %arg3: memref<1x1x128xbf16, #tpu.memory_space<vmem>>, %arg4: memref<9x128x128xbf16, #tpu.memory_space<vmem>>, %arg5: memref<1x1x128xf32, #tpu.memory_space<vmem>>, %arg6: memref<1x1x64x1xf32, #tpu.memory_space<vmem>>, %arg7: memref<1x128xf32, #tpu.memory_space<vmem>>, %arg8: memref<1x128xf32, #tpu.memory_space<vmem>>, %arg9: memref<1x1x64x128xf32, #tpu.memory_space<vmem>>) attributes {dimension_semantics = [#tpu.dimension_semantics<parallel>, #tpu.dimension_semantics<parallel>], iteration_bounds = array<i64: 2, 5>, scalar_prefetch = 0 : i64, scratch_operands = 0 : i64, tpu.core_type = #tpu.core_type<tc>, window_params = [{transform_indices = @transform_0, window_bounds = array<i64: 1, 1, 102, 128>}, {transform_indices = @transform_1, window_bounds = array<i64: 1, 1, 128>}, {pipeline_mode = #tpu.pipeline_mode<synchronous>, transform_indices = @transform_2, window_bounds = array<i64: 9, 128, 128>}, {transform_indices = @transform_3, window_bounds = array<i64: 1, 1, 128>}, {transform_indices = @transform_4, window_bounds = array<i64: 1, 1, 64, 1>}, {pipeline_mode = #tpu.pipeline_mode<synchronous>, transform_indices = @transform_5, window_bounds = array<i64: 1, 128>}, {pipeline_mode = #tpu.pipeline_mode<synchronous>, transform_indices = @transform_6, window_bounds = array<i64: 1, 128>}, {transform_indices = @transform_7, window_bounds = array<i64: 1, 1, 64, 128>}]} {
    %c0 = arith.constant 0 : index
    %c0_0 = arith.constant 0 : index
    %c0_1 = arith.constant 0 : index
    %0 = vector.load %arg3[%c0, %c0_0, %c0_1] : memref<1x1x128xbf16, #tpu.memory_space<vmem>>, vector<1x1x128xbf16>
    %1 = vector.shape_cast %0 : vector<1x1x128xbf16> to vector<1x128xbf16>
    %c0_2 = arith.constant 0 : index
    %c0_3 = arith.constant 0 : index
    %c0_4 = arith.constant 0 : index
    %c0_5 = arith.constant 0 : index
    %2 = vector.load %arg2[%c0_2, %c0_3, %c0_4, %c0_5] : memref<1x1x102x128xbf16, #tpu.memory_space<vmem>>, vector<1x1x64x128xbf16>
    %3 = vector.shape_cast %2 : vector<1x1x64x128xbf16> to vector<64x128xbf16>
    %4 = vector.broadcast %1 : vector<1x128xbf16> to vector<64x128xbf16>
    %5 = arith.mulf %3, %4 : vector<64x128xbf16>
    %c0_6 = arith.constant 0 : index
    %c0_7 = arith.constant 0 : index
    %c0_8 = arith.constant 0 : index
    %6 = vector.load %arg4[%c0_6, %c0_7, %c0_8] : memref<9x128x128xbf16, #tpu.memory_space<vmem>>, vector<1x128x128xbf16>
    %7 = vector.shape_cast %6 : vector<1x128x128xbf16> to vector<128x128xbf16>
    %cst = arith.constant dense<0.000000e+00> : vector<64x128xf32>
    %8 = tpu.matmul %5, %7, %cst {dimension_numbers = #tpu.dot_dimension_numbers<[1], [0], [0], [1], [0, 0, 1, 1], [], []>} : vector<64x128xbf16>, vector<128x128xbf16>, vector<64x128xf32> -> vector<64x128xf32>
    %c0_9 = arith.constant 0 : index
    %c0_10 = arith.constant 0 : index
    %c1 = arith.constant 1 : index
    %c0_11 = arith.constant 0 : index
    %9 = vector.load %arg2[%c0_9, %c0_10, %c1, %c0_11] : memref<1x1x102x128xbf16, #tpu.memory_space<vmem>>, vector<1x1x64x128xbf16>
    %10 = vector.shape_cast %9 : vector<1x1x64x128xbf16> to vector<64x128xbf16>
    %11 = vector.broadcast %1 : vector<1x128xbf16> to vector<64x128xbf16>
    %12 = arith.mulf %10, %11 : vector<64x128xbf16>
    %c1_12 = arith.constant 1 : index
    %c0_13 = arith.constant 0 : index
    %c0_14 = arith.constant 0 : index
    %13 = vector.load %arg4[%c1_12, %c0_13, %c0_14] : memref<9x128x128xbf16, #tpu.memory_space<vmem>>, vector<1x128x128xbf16>
    %14 = vector.shape_cast %13 : vector<1x128x128xbf16> to vector<128x128xbf16>
    %cst_15 = arith.constant dense<0.000000e+00> : vector<64x128xf32>
    %15 = tpu.matmul %12, %14, %cst_15 {dimension_numbers = #tpu.dot_dimension_numbers<[1], [0], [0], [1], [0, 0, 1, 1], [], []>} : vector<64x128xbf16>, vector<128x128xbf16>, vector<64x128xf32> -> vector<64x128xf32>
    %16 = arith.addf %8, %15 : vector<64x128xf32>
    %c0_16 = arith.constant 0 : index
    %c0_17 = arith.constant 0 : index
    %c2 = arith.constant 2 : index
    %c0_18 = arith.constant 0 : index
    %17 = vector.load %arg2[%c0_16, %c0_17, %c2, %c0_18] : memref<1x1x102x128xbf16, #tpu.memory_space<vmem>>, vector<1x1x64x128xbf16>
    %18 = vector.shape_cast %17 : vector<1x1x64x128xbf16> to vector<64x128xbf16>
    %19 = vector.broadcast %1 : vector<1x128xbf16> to vector<64x128xbf16>
    %20 = arith.mulf %18, %19 : vector<64x128xbf16>
    %c2_19 = arith.constant 2 : index
    %c0_20 = arith.constant 0 : index
    %c0_21 = arith.constant 0 : index
    %21 = vector.load %arg4[%c2_19, %c0_20, %c0_21] : memref<9x128x128xbf16, #tpu.memory_space<vmem>>, vector<1x128x128xbf16>
    %22 = vector.shape_cast %21 : vector<1x128x128xbf16> to vector<128x128xbf16>
    %cst_22 = arith.constant dense<0.000000e+00> : vector<64x128xf32>
    %23 = tpu.matmul %20, %22, %cst_22 {dimension_numbers = #tpu.dot_dimension_numbers<[1], [0], [0], [1], [0, 0, 1, 1], [], []>} : vector<64x128xbf16>, vector<128x128xbf16>, vector<64x128xf32> -> vector<64x128xf32>
    %24 = arith.addf %16, %23 : vector<64x128xf32>
    %c0_23 = arith.constant 0 : index
    %c0_24 = arith.constant 0 : index
    %c18 = arith.constant 18 : index
    %c0_25 = arith.constant 0 : index
    %25 = vector.load %arg2[%c0_23, %c0_24, %c18, %c0_25] : memref<1x1x102x128xbf16, #tpu.memory_space<vmem>>, vector<1x1x64x128xbf16>
    %26 = vector.shape_cast %25 : vector<1x1x64x128xbf16> to vector<64x128xbf16>
    %27 = vector.broadcast %1 : vector<1x128xbf16> to vector<64x128xbf16>
    %28 = arith.mulf %26, %27 : vector<64x128xbf16>
    %c3 = arith.constant 3 : index
    %c0_26 = arith.constant 0 : index
    %c0_27 = arith.constant 0 : index
    %29 = vector.load %arg4[%c3, %c0_26, %c0_27] : memref<9x128x128xbf16, #tpu.memory_space<vmem>>, vector<1x128x128xbf16>
    %30 = vector.shape_cast %29 : vector<1x128x128xbf16> to vector<128x128xbf16>
    %cst_28 = arith.constant dense<0.000000e+00> : vector<64x128xf32>
    %31 = tpu.matmul %28, %30, %cst_28 {dimension_numbers = #tpu.dot_dimension_numbers<[1], [0], [0], [1], [0, 0, 1, 1], [], []>} : vector<64x128xbf16>, vector<128x128xbf16>, vector<64x128xf32> -> vector<64x128xf32>
    %32 = arith.addf %24, %31 : vector<64x128xf32>
    %c0_29 = arith.constant 0 : index
    %c0_30 = arith.constant 0 : index
    %c19 = arith.constant 19 : index
    %c0_31 = arith.constant 0 : index
    %33 = vector.load %arg2[%c0_29, %c0_30, %c19, %c0_31] : memref<1x1x102x128xbf16, #tpu.memory_space<vmem>>, vector<1x1x64x128xbf16>
    %34 = vector.shape_cast %33 : vector<1x1x64x128xbf16> to vector<64x128xbf16>
    %35 = vector.broadcast %1 : vector<1x128xbf16> to vector<64x128xbf16>
    %36 = arith.mulf %34, %35 : vector<64x128xbf16>
    %c4 = arith.constant 4 : index
    %c0_32 = arith.constant 0 : index
    %c0_33 = arith.constant 0 : index
    %37 = vector.load %arg4[%c4, %c0_32, %c0_33] : memref<9x128x128xbf16, #tpu.memory_space<vmem>>, vector<1x128x128xbf16>
    %38 = vector.shape_cast %37 : vector<1x128x128xbf16> to vector<128x128xbf16>
    %cst_34 = arith.constant dense<0.000000e+00> : vector<64x128xf32>
    %39 = tpu.matmul %36, %38, %cst_34 {dimension_numbers = #tpu.dot_dimension_numbers<[1], [0], [0], [1], [0, 0, 1, 1], [], []>} : vector<64x128xbf16>, vector<128x128xbf16>, vector<64x128xf32> -> vector<64x128xf32>
    %40 = arith.addf %32, %39 : vector<64x128xf32>
    %c0_35 = arith.constant 0 : index
    %c0_36 = arith.constant 0 : index
    %c20 = arith.constant 20 : index
    %c0_37 = arith.constant 0 : index
    %41 = vector.load %arg2[%c0_35, %c0_36, %c20, %c0_37] : memref<1x1x102x128xbf16, #tpu.memory_space<vmem>>, vector<1x1x64x128xbf16>
    %42 = vector.shape_cast %41 : vector<1x1x64x128xbf16> to vector<64x128xbf16>
    %43 = vector.broadcast %1 : vector<1x128xbf16> to vector<64x128xbf16>
    %44 = arith.mulf %42, %43 : vector<64x128xbf16>
    %c5 = arith.constant 5 : index
    %c0_38 = arith.constant 0 : index
    %c0_39 = arith.constant 0 : index
    %45 = vector.load %arg4[%c5, %c0_38, %c0_39] : memref<9x128x128xbf16, #tpu.memory_space<vmem>>, vector<1x128x128xbf16>
    %46 = vector.shape_cast %45 : vector<1x128x128xbf16> to vector<128x128xbf16>
    %cst_40 = arith.constant dense<0.000000e+00> : vector<64x128xf32>
    %47 = tpu.matmul %44, %46, %cst_40 {dimension_numbers = #tpu.dot_dimension_numbers<[1], [0], [0], [1], [0, 0, 1, 1], [], []>} : vector<64x128xbf16>, vector<128x128xbf16>, vector<64x128xf32> -> vector<64x128xf32>
    %48 = arith.addf %40, %47 : vector<64x128xf32>
    %c0_41 = arith.constant 0 : index
    %c0_42 = arith.constant 0 : index
    %c36 = arith.constant 36 : index
    %c0_43 = arith.constant 0 : index
    %49 = vector.load %arg2[%c0_41, %c0_42, %c36, %c0_43] : memref<1x1x102x128xbf16, #tpu.memory_space<vmem>>, vector<1x1x64x128xbf16>
    %50 = vector.shape_cast %49 : vector<1x1x64x128xbf16> to vector<64x128xbf16>
    %51 = vector.broadcast %1 : vector<1x128xbf16> to vector<64x128xbf16>
    %52 = arith.mulf %50, %51 : vector<64x128xbf16>
    %c6 = arith.constant 6 : index
    %c0_44 = arith.constant 0 : index
    %c0_45 = arith.constant 0 : index
    %53 = vector.load %arg4[%c6, %c0_44, %c0_45] : memref<9x128x128xbf16, #tpu.memory_space<vmem>>, vector<1x128x128xbf16>
    %54 = vector.shape_cast %53 : vector<1x128x128xbf16> to vector<128x128xbf16>
    %cst_46 = arith.constant dense<0.000000e+00> : vector<64x128xf32>
    %55 = tpu.matmul %52, %54, %cst_46 {dimension_numbers = #tpu.dot_dimension_numbers<[1], [0], [0], [1], [0, 0, 1, 1], [], []>} : vector<64x128xbf16>, vector<128x128xbf16>, vector<64x128xf32> -> vector<64x128xf32>
    %56 = arith.addf %48, %55 : vector<64x128xf32>
    %c0_47 = arith.constant 0 : index
    %c0_48 = arith.constant 0 : index
    %c37 = arith.constant 37 : index
    %c0_49 = arith.constant 0 : index
    %57 = vector.load %arg2[%c0_47, %c0_48, %c37, %c0_49] : memref<1x1x102x128xbf16, #tpu.memory_space<vmem>>, vector<1x1x64x128xbf16>
    %58 = vector.shape_cast %57 : vector<1x1x64x128xbf16> to vector<64x128xbf16>
    %59 = vector.broadcast %1 : vector<1x128xbf16> to vector<64x128xbf16>
    %60 = arith.mulf %58, %59 : vector<64x128xbf16>
    %c7 = arith.constant 7 : index
    %c0_50 = arith.constant 0 : index
    %c0_51 = arith.constant 0 : index
    %61 = vector.load %arg4[%c7, %c0_50, %c0_51] : memref<9x128x128xbf16, #tpu.memory_space<vmem>>, vector<1x128x128xbf16>
    %62 = vector.shape_cast %61 : vector<1x128x128xbf16> to vector<128x128xbf16>
    %cst_52 = arith.constant dense<0.000000e+00> : vector<64x128xf32>
    %63 = tpu.matmul %60, %62, %cst_52 {dimension_numbers = #tpu.dot_dimension_numbers<[1], [0], [0], [1], [0, 0, 1, 1], [], []>} : vector<64x128xbf16>, vector<128x128xbf16>, vector<64x128xf32> -> vector<64x128xf32>
    %64 = arith.addf %56, %63 : vector<64x128xf32>
    %c0_53 = arith.constant 0 : index
    %c0_54 = arith.constant 0 : index
    %c38 = arith.constant 38 : index
    %c0_55 = arith.constant 0 : index
    %65 = vector.load %arg2[%c0_53, %c0_54, %c38, %c0_55] : memref<1x1x102x128xbf16, #tpu.memory_space<vmem>>, vector<1x1x64x128xbf16>
    %66 = vector.shape_cast %65 : vector<1x1x64x128xbf16> to vector<64x128xbf16>
    %67 = vector.broadcast %1 : vector<1x128xbf16> to vector<64x128xbf16>
    %68 = arith.mulf %66, %67 : vector<64x128xbf16>
    %c8 = arith.constant 8 : index
    %c0_56 = arith.constant 0 : index
    %c0_57 = arith.constant 0 : index
    %69 = vector.load %arg4[%c8, %c0_56, %c0_57] : memref<9x128x128xbf16, #tpu.memory_space<vmem>>, vector<1x128x128xbf16>
    %70 = vector.shape_cast %69 : vector<1x128x128xbf16> to vector<128x128xbf16>
    %cst_58 = arith.constant dense<0.000000e+00> : vector<64x128xf32>
    %71 = tpu.matmul %68, %70, %cst_58 {dimension_numbers = #tpu.dot_dimension_numbers<[1], [0], [0], [1], [0, 0, 1, 1], [], []>} : vector<64x128xbf16>, vector<128x128xbf16>, vector<64x128xf32> -> vector<64x128xf32>
    %72 = arith.addf %64, %71 : vector<64x128xf32>
    %c0_59 = arith.constant 0 : index
    %c0_60 = arith.constant 0 : index
    %c0_61 = arith.constant 0 : index
    %73 = vector.load %arg5[%c0_59, %c0_60, %c0_61] : memref<1x1x128xf32, #tpu.memory_space<vmem>>, vector<1x1x128xf32>
    %74 = vector.shape_cast %73 : vector<1x1x128xf32> to vector<1x128xf32>
    %75 = vector.broadcast %74 : vector<1x128xf32> to vector<64x128xf32>
    %76 = arith.mulf %72, %75 : vector<64x128xf32>
    %c0_62 = arith.constant 0 : index
    %c0_63 = arith.constant 0 : index
    %c0_64 = arith.constant 0 : index
    %c0_65 = arith.constant 0 : index
    %77 = vector.load %arg6[%c0_62, %c0_63, %c0_64, %c0_65] : memref<1x1x64x1xf32, #tpu.memory_space<vmem>>, vector<1x1x64x1xf32>
    %78 = vector.shape_cast %77 : vector<1x1x64x1xf32> to vector<64x1xf32>
    %c0_66 = arith.constant 0 : index
    %c0_67 = arith.constant 0 : index
    %79 = vector.load %arg7[%c0_66, %c0_67] : memref<1x128xf32, #tpu.memory_space<vmem>>, vector<1x128xf32>
    %80 = vector.broadcast %78 : vector<64x1xf32> to vector<64x128xf32>
    %81 = vector.broadcast %79 : vector<1x128xf32> to vector<64x128xf32>
    %82 = arith.mulf %80, %81 : vector<64x128xf32>
    %83 = arith.addf %76, %82 : vector<64x128xf32>
    %c0_68 = arith.constant 0 : index
    %c0_69 = arith.constant 0 : index
    %84 = vector.load %arg8[%c0_68, %c0_69] : memref<1x128xf32, #tpu.memory_space<vmem>>, vector<1x128xf32>
    %85 = vector.broadcast %84 : vector<1x128xf32> to vector<64x128xf32>
    %86 = arith.addf %83, %85 : vector<64x128xf32>
    %cst_70 = arith.constant 0.000000e+00 : f32
    %87 = vector.broadcast %cst_70 : f32 to vector<64x128xf32>
    %88 = arith.cmpf oge, %86, %87 : vector<64x128xf32>
    %cst_71 = arith.constant 2.000000e-01 : f32
    %89 = vector.broadcast %cst_71 : f32 to vector<64x128xf32>
    %90 = arith.mulf %89, %86 : vector<64x128xf32>
    %91 = arith.select %88, %86, %90 : vector<64x128xi1>, vector<64x128xf32>
    %c0_72 = arith.constant 0 : index
    %c0_73 = arith.constant 0 : index
    %c0_74 = arith.constant 0 : index
    %c0_75 = arith.constant 0 : index
    %92 = vector.load %arg9[%c0_72, %c0_73, %c0_74, %c0_75] : memref<1x1x64x128xf32, #tpu.memory_space<vmem>>, vector<1x1x64x128xf32>
    %93 = vector.shape_cast %92 : vector<1x1x64x128xf32> to vector<64x128xf32>
    %94 = vector.shape_cast %91 : vector<64x128xf32> to vector<1x1x64x128xf32>
    tpu.vector_store %arg9[%c0_72, %c0_73, %c0_74, %c0_75], %94 {strides = array<i32>} : memref<1x1x64x128xf32, #tpu.memory_space<vmem>>, vector<1x1x64x128xf32>,
    return
  }
  func.func @transform_0(%arg0: i32, %arg1: i32) -> (i32, i32, i32, i32) {
    %c0_i32 = arith.constant 0 : i32
    %c0_i32_0 = arith.constant 0 : i32
    %c0_i32_1 = arith.constant 0 : i32
    return %arg0, %arg1, %c0_i32, %c0_i32_0 : i32, i32, i32, i32
  }
  func.func @transform_1(%arg0: i32, %arg1: i32) -> (i32, i32, i32) {
    %c0_i32 = arith.constant 0 : i32
    %c0_i32_0 = arith.constant 0 : i32
    %c0_i32_1 = arith.constant 0 : i32
    return %arg0, %c0_i32, %c0_i32_0 : i32, i32, i32
  }
  func.func @transform_2(%arg0: i32, %arg1: i32) -> (i32, i32, i32) {
    %c0_i32 = arith.constant 0 : i32
    %c0_i32_0 = arith.constant 0 : i32
    %c0_i32_1 = arith.constant 0 : i32
    %c0_i32_2 = arith.constant 0 : i32
    return %c0_i32, %c0_i32_0, %c0_i32_1 : i32, i32, i32
  }
  func.func @transform_3(%arg0: i32, %arg1: i32) -> (i32, i32, i32) {
    %c0_i32 = arith.constant 0 : i32
    %c0_i32_0 = arith.constant 0 : i32
    %c0_i32_1 = arith.constant 0 : i32
    return %arg0, %c0_i32, %c0_i32_0 : i32, i32, i32
  }
  func.func @transform_4(%arg0: i32, %arg1: i32) -> (i32, i32, i32, i32) {
    %c0_i32 = arith.constant 0 : i32
    %c0_i32_0 = arith.constant 0 : i32
    %c0_i32_1 = arith.constant 0 : i32
    return %arg0, %arg1, %c0_i32, %c0_i32_0 : i32, i32, i32, i32
  }
  func.func @transform_5(%arg0: i32, %arg1: i32) -> (i32, i32) {
    %c0_i32 = arith.constant 0 : i32
    %c0_i32_0 = arith.constant 0 : i32
    %c0_i32_1 = arith.constant 0 : i32
    return %c0_i32, %c0_i32_0 : i32, i32
  }
  func.func @transform_6(%arg0: i32, %arg1: i32) -> (i32, i32) {
    %c0_i32 = arith.constant 0 : i32
    %c0_i32_0 = arith.constant 0 : i32
    %c0_i32_1 = arith.constant 0 : i32
    return %c0_i32, %c0_i32_0 : i32, i32
  }
  func.func @transform_7(%arg0: i32, %arg1: i32) -> (i32, i32, i32, i32) {
    %c0_i32 = arith.constant 0 : i32
    %c0_i32_0 = arith.constant 0 : i32
    %c0_i32_1 = arith.constant 0 : i32
    return %arg0, %arg1, %c0_i32, %c0_i32_0 : i32, i32, i32, i32
  }
}

</mosaic_0001>

<bundles_post_ra>
// kernel: tpu_custom_call.1
= control target key start
LH: loop header
LB: loop body
LE: loop exit
PB: predicated region body
PF: predicated region fallthrough
CT: control target
= control target key end

     0   :  { %12 = vsyncpa [#allocation3], 0  ;;  %s3818_s0 = inlined_call_operand.vmem [shape: bf16[2,5,102,128], index: 0, kind: input, shape index: {}]   ;;  %s3819_s1 = inlined_call_operand.vmem [shape: bf16[2,1,128], index: 1, kind: input, shape index: {}]   ;;  %s3820_s2 = inlined_call_operand.vmem [shape: bf16[9,128,128], index: 2, kind: input, shape index: {}]   ;;  %s3821_s3 = inlined_call_operand.vmem [shape: f32[2,1,128], index: 3, kind: input, shape index: {}]   ;;  %s3822_s4 = inlined_call_operand.vmem [shape: f32[2,5,64,1], index: 4, kind: input, shape index: {}]   ;;  %s3823_s5 = inlined_call_operand.vmem [shape: f32[1,128], index: 5, kind: input, shape index: {}]   ;;  %s3824_s6 = inlined_call_operand.vmem [shape: f32[1,128], index: 6, kind: input, shape index: {}]   ;;  %s3825_s7 = inlined_call_operand.hbm [shape: f32[2,5,64,128], index: 7, kind: output, shape index: {}]  }
   0x1   :  { %14 = vsyncpa [#allocation3 + $0x1], 0  ;;  %s3171_s24 = smov 0   ;;  %s3173_s25 = smov 0  }
   0x2   :  { %s3175_s26 = smov 0   ;;  %s3177_s27 = smov 0  }
   0x3   :  { %s3179_s28 = smov 0   ;;  %s3181_s29 = smov 0  }
   0x4   :  { %s3183_s30 = smov 0   ;;  %s3185_s8 = smov 0  }
   0x5 LB: > { %3830 = sst [smem:[#allocation5_spill]] %s3117_s29  ;;  %s2237_s9 = sadd.s32 4294967295, %s3125_s8   ;;  %s3125_s8 = sphi %s3185_s8, %s20_s8   ;;  %s3121_s30 = sphi %s3183_s30, %s3839_s30   ;;  %s3117_s29 = sphi %s3181_s29, %s3838_s29   ;;  %s3113_s28 = sphi %s3179_s28, %s3837_s28   ;;  %s3109_s27 = sphi %s3177_s27, %s3836_s27   ;;  %s3105_s26 = sphi %s3175_s26, %s3842_s26   ;;  %s3101_s25 = sphi %s3173_s25, %s3841_s25   ;;  %s3097_s24 = sphi %s3171_s24, %s3840_s24  }
   0x6   : > { %3831 = sst [smem:[#allocation6_spill]] %s3121_s30  ;;  %s2238_s10 = sadd.s32 4294967294, %s3125_s8  }
   0x7   : > { %s29_s11 = sadd.s32 1, %s3117_s29  ;;  %s32_s12 = sadd.s32 1, %s3121_s30 }
   0x8   : > { %p30_p0 = scmp.ge.s32.totalorder %s29_s11, 5  ;;  %p222_p1 = scmp.ne.s32.totalorder %s3105_s26, %s3101_s25 }
   0x9   : > { %p223_p2 = scmp.eq.s32.totalorder %s2237_s9, 9  ;;  %p228_p5 = scmp.ne.s32.totalorder %s3101_s25, %s3097_s24 }
   0xa   : > { %s3844_s11 = smov (%p30_p0, %s29_s11), 0  ;;  %s3846_s12 = smov (!%p30_p0, %s32_s12), %s3121_s30 }
   0xb   : > { %3832 = sst [smem:[#allocation7_spill]] %s3844_s11  ;;  %s208_s13 = ssub.s32 %s3117_s29, %s3844_s11 }
   0xc   : > { %p3222_p3 = por %p223_p2, %p222_p1  ;;  %p34_p4 = scmp.ge.s32.totalorder %s3846_s12, 2 }
   0xd   : > { %p229_p6 = scmp.eq.s32.totalorder %s2238_s10, 9  ;;  %p2241_p7 = scmp.ge.s32.totalorder %s3125_s8, 1 }
   0xe   : > { %s3848_s12 = smov (%p34_p4, %s3846_s12), 0  ;;  %p292_p9 = scmp.lt.s32.totalorder %s3125_s8, 11 }
   0xf   : > { %3834 = sst [smem:[#allocation8_spill]] %s3848_s12  ;;  %p3231_p8 = por %p229_p6, %p228_p5 }
  0x10   : > { %s207_s16 = ssub.s32 %s3121_s30, %s3848_s12  ;;  %s212_s17 = sadd.s32 1, %s3105_s26 }
  0x11   : > { %s209_s18 = sor.u32 %s208_s13, %s207_s16  ;;  %p293_p10 = pnand %p2241_p7, %p292_p9 }
  0x12   : > { %p210_p11 = scmp.eq.s32.totalorder %s209_s18, 0  ;;  %v2959_v0 = vld [vmem:[%s3820_s2 + $0x40] sm:$0xff] (!%p293_p10)   ;;  %p343_p12 = scmp.lt.s32.totalorder (!%p293_p10), %s3113_s28, 1  ;;  %v2961_v2 = vld [vmem:[%s3820_s2 + $0x48] sm:$0xff] (!%p293_p10)   ;;  %v2963_v4 = vld [vmem:[%s3820_s2 + $0x50] sm:$0xff] (!%p293_p10)   ;;  %v380_v6 = vlaneseq (!%p293_p10)  ;;  %vm1288_vm2 = vcmask (!%p293_p10), 1045504  }
  0x13   : > { %296 = sbr.rel (%p293_p10) target bundleno = 425 (0x1a9), region = 48  ;;  %v2960_v1 = vld [vmem:[%s3820_s2 + $0x100] sm:$0xff] (!%p293_p10)   ;;  %p345_p13 = scmp.lt.s32.totalorder (!%p293_p10), %s3109_s27, 4  ;;  %2583 = vmatprep.subr.bf16.mxu1 (!%p293_p10), %v2959_v0  ;;  %v2962_v3 = vld [vmem:[%s3820_s2 + $0x108] sm:$0xff] (!%p293_p10)   ;;  %v2964_v5 = vld [vmem:[%s3820_s2 + $0x110] sm:$0xff] (!%p293_p10)   ;;  %vm747_vm3 = vcmask (!%p293_p10), 1046528  }
  0x14   : > { %s3240_s19 = scalar_select %p210_p11, %s3105_s26, %s212_s17  }
  0x15   : > { %2679 = vmatprep.subr.bf16.mxu0 (!%p293_p10), %v2960_v1  ;;  %2584 = vmatpush3.bf16.msra.mxu1 (!%p293_p10), %v2959_v0  ;;  %v2965_v7 = vld [vmem:[%s3820_s2 + $0x58] sm:$0xff] (!%p293_p10)   ;;  %v381_v9 = vshrl.u32 (!%p293_p10), %v380_v6, 7  ;;  %v2967_v10 = vld [vmem:[%s3820_s2 + $0x60] sm:$0xff] (!%p293_p10)   ;;  %v2969_v13 = vld [vmem:[%s3820_s2 + $0x68] sm:$0xff] (!%p293_p10)   ;;  %vm454_vm0 = vsmask.f32 (!%p293_p10), 7424 }
  0x16   : > { %2680 = vmatpush3.bf16.msra.mxu0 (!%p293_p10), %v2960_v1  ;;  %2585 = vmatprep.subr.bf16.mxu1 (!%p293_p10), %v2961_v2  ;;  %v2966_v8 = vld [vmem:[%s3820_s2 + $0x118] sm:$0xff] (!%p293_p10)   ;;  %v2968_v11 = vld [vmem:[%s3820_s2 + $0x120] sm:$0xff] (!%p293_p10)   ;;  %v2970_v15 = vld [vmem:[%s3820_s2 + $0x128] sm:$0xff] (!%p293_p10)   ;;  %vm1096_vm1 = vsmask.f32 (!%p293_p10), 6400  ;;  %vm1829_vm4 = vcmask (!%p293_p10), 1044480  }
  0x17   : > { %2681 = vmatprep.subr.bf16.mxu0 (!%p293_p10), %v2962_v3  ;;  %v382_v12 = vsub.s32 (!%p293_p10), 0, %v381_v9  ;;  %v2971_v17 = vld [vmem:[%s3820_s2 + $0x70] sm:$0xff] (!%p293_p10)   ;;  %v2973_v29 = vld [vmem:[%s3820_s2 + $0x78] sm:$0xff] (!%p293_p10)   ;;  %v2975_v53 = vld [vmem:[%s3820_s2] sm:$0xff] (!%p293_p10)   ;;  %vm1637_vm5 = vsmask.f32 (!%p293_p10), 5376 }
  0x18   : > { %v2972_v19 = vld [vmem:[%s3820_s2 + $0x130] sm:$0xff] (!%p293_p10)   ;;  %v2974_v41 = vld [vmem:[%s3820_s2 + $0x138] sm:$0xff] (!%p293_p10)   ;;  %v2976_v57 = vld [vmem:[%s3820_s2 + $0x140] sm:$0xff] (!%p293_p10)  }
  0x19   : > { %2586 = vmatpush3.bf16.msra.mxu1 (!%p293_p10), %v2961_v2 }
  0x1a   : > { %s3254_s13 = scalar_select %p343_p12, %s3113_s28, 1  ;;  %2682 = vmatpush3.bf16.msra.mxu0 %v2962_v3  ;;  %2587 = vmatprep.subr.bf16.mxu1 %v2963_v4 }
  0x1b   : > { %s3260_s18 = scalar_select %p345_p13, %s3109_s27, 4  ;;  %2683 = vmatprep.subr.bf16.mxu0 %v2964_v5 }
  0x1c   : > { %s2880_s22 = smul.u32 65, %s3254_s13  ;;  %s354_s12 = scalar_lea.vmem %s3819_s1, %s3254_s13 }
  0x1d   : > { %s2879_s10 = smul.u32 13, %s3260_s18  ;;  %2588 = vmatpush3.bf16.msra.mxu1 %v2963_v4  ;;  %v368_v14 = vld [vmem:[%s354_s12] sm:$0x1]  ;;  %s2244_s12 = sshll.u32 %s3260_s18, 3 }
  0x1e   : > { %2684 = vmatpush3.bf16.msra.mxu0 %v2964_v5  ;;  %2589 = vmatprep.subr.bf16.mxu1 %v2965_v7  ;;  %v378_v16 = vpack.i.b16 %v368_v14, %v368_v14  ;;  %s357_s9 = scalar_lea.vmem %s3821_s3, %s3254_s13  ;;  %s2471_s18 = sshll.u32 %s3109_s27, 3 }
  0x1f   : > { %s349_s21 = sadd.s32 %s2880_s22, %s2879_s10  ;;  %2685 = vmatprep.subr.bf16.mxu0 %v2966_v8  ;;  %s2881_s22 = smul.u32 40, %s3254_s13 }
  0x20   : > { %s2243_s11 = sshll.u32 %s349_s21, 2  ;;  %v383_v23 = vrot.slane %v378_v16, %v382_v12  ;;  %v2977_v12 = vld [vmem:[%s3820_s2 + $0x8] sm:$0xff]  }
  0x21   : > { %2590 = vmatpush3.bf16.msra.mxu1 %v2965_v7  ;;  %s3289_s20 = scalar_lea.vmem %s3818_s0, %s2243_s11  ;;  %s364_s10 = sadd.s32 %s2881_s22, %s2244_s12 }
  0x22   : > { %2686 = vmatpush3.bf16.msra.mxu0 %v2966_v8  ;;  %2591 = vmatprep.subr.bf16.mxu1 %v2967_v10  ;;  %v369_v18 = vld [vmem:[%s3289_s20] sm:$0xf]  ;;  %v370_v20 = vld [vmem:[%s3289_s20 + $0x4] sm:$0xf]  ;;  %v371_v21 = vld [vmem:[%s3289_s20 + $0x8] sm:$0xf]  ;;  %v3309_v26 = vcombine.low %v383_v23, %v383_v23 }
  0x23   : > { %2687 = vmatprep.subr.bf16.mxu0 %v2968_v11  ;;  %v372_v22 = vld [vmem:[%s3289_s20 + $0xc] sm:$0xf]  ;;  %v882_v24 = vld [vmem:[%s3289_s20 + $0x8] sm:$0xe]  ;;  %v884_v27 = vld [vmem:[%s3289_s20 + $0x10] sm:$0xf] }
  0x24   : > { %v883_v25 = vld [vmem:[%s3289_s20 + $0xc] sm:$0xf]  ;;  %v885_v28 = vld [vmem:[%s3289_s20 + $0x14] sm:$0xf]  ;;  %v373_v30 = vld [vmem:[%s3289_s20 + $0x10] sm:$0xf]  ;;  %v388_v33 = vmul.bf16 %v3309_v26, %v369_v18  ;;  %v3321_v34 = vmul.bf16 %v3309_v26, %v370_v20  ;;  %v390_v35 = vmul.bf16 %v3309_v26, %v371_v21  ;;  %v391_v36 = vmul.bf16 %v3309_v26, %v372_v22 }
  0x25   : > { %2592 = vmatpush3.bf16.msra.mxu1 %v2967_v10  ;;  %v374_v31 = vld [vmem:[%s3289_s20 + $0x14] sm:$0xf]  ;;  %v886_v32 = vld [vmem:[%s3289_s20 + $0x18] sm:$0xf]  ;;  %v887_v37 = vld [vmem:[%s3289_s20 + $0x1c] sm:$0xf]  ;;  %v891_v38 = vmul.bf16 %v3309_v26, %v882_v24  ;;  %v3328_v39 = vmul.bf16 %v3309_v26, %v883_v25  ;;  %v893_v40 = vmul.bf16 %v3309_v26, %v884_v27  ;;  %v894_v44 = vmul.bf16 %v3309_v26, %v885_v28 }
  0x26   : > { %2688 = vmatpush3.bf16.msra.mxu0 %v2968_v11  ;;  %2593 = vmatprep.subr.bf16.mxu1 %v2969_v13  ;;  %v3335_v42 = vcombine.low %v388_v33, %v3321_v34  ;;  %v3337_v43 = vcombine.low %v390_v35, %v391_v36  ;;  %v392_v45 = vmul.bf16 %v3309_v26, %v373_v30  ;;  %v375_v20 = vld [vmem:[%s3289_s20 + $0x18] sm:$0xf]  ;;  %v376_v21 = vld [vmem:[%s3289_s20 + $0x1c] sm:$0xf]  ;;  %v2979_v23 = vld [vmem:[%s3820_s2 + $0x10] sm:$0xff]   ;;  %s2245_s21 = sshll.u32 %s364_s10, 3 }
  0x27   : > { %2689 = vmatprep.subr.bf16.mxu0 %v2970_v15  ;;  %v3342_v46 = vcombine.low %v891_v38, %v3328_v39  ;;  %v393_v47 = vmul.bf16 %v3309_v26, %v374_v31  ;;  %v895_v48 = vmul.bf16 %v3309_v26, %v886_v32  ;;  %v896_v49 = vmul.bf16 %v3309_v26, %v887_v37  ;;  %v888_v28 = vld [vmem:[%s3289_s20 + $0x20] sm:$0xf]  ;;  %v1074_v37 = vld [vmem:[%s3289_s20 + $0x28] sm:$0x3]  ;;  %v2980_v38 = vld [vmem:[%s3820_s2 + $0x150] sm:$0xff]   ;;  %s3585_s16 = scalar_lea.vmem %s3822_s4, %s2245_s21  ;;  %s340_s22 = sand.u32 1, %s3101_s25  }
  0x28   : > { %v456_v50 = vshrl.u32 %v3335_v42, 16  ;;  %v458_v51 = vshll.u32 %v3335_v42, 16  ;;  %v463_v52 = vshll.u32 %v3337_v43, 16  ;;  %v3353_v54 = vcombine.low %v893_v40, %v894_v44  ;;  %v412_v33 = vld [vmem:[%s3289_s20 + $0x20] sm:$0x1]  ;;  %v2981_v40 = vld [vmem:[%s3820_s2 + $0x18] sm:$0xff]  }
  0x29   : > { %2594 = vmatpush3.bf16.msra.mxu1 %v2969_v13  ;;  %v1098_v55 = vshrl.u32 %v3342_v46, 16  ;;  %v1101_v56 = vshll.u32 %v3342_v46, 16  ;;  %v3360_v58 = vcombine.low %v392_v45, %v393_v47  ;;  %v467_v59 = vshrl.u32 %v3337_v43, 16  ;;  %s3738_s21 = sshll.u32 %s340_s22, 6  ;;  %s3128_s12 = smov [#allocation2]  }
  0x2a   : > { %2690 = vmatpush3.bf16.msra.mxu0 %v2970_v15  ;;  %2595 = vmatprep.subr.bf16.mxu1 %v2971_v17  ;;  %v460_v60 = vrot.slane %v458_v51, 1  ;;  %v465_v61 = vrot.slane %v463_v52, 1  ;;  %v1106_v62 = vshrl.u32 %v3353_v54, 16  ;;  %v1109_v63 = vshll.u32 %v3353_v54, 16  ;;  %v1266_v52 = vld [vmem:[%s3289_s20 + $0x8] sm:$0xc] }
  0x2b   : > { %2691 = vmatprep.subr.bf16.mxu0 %v2972_v19  ;;  %v1100_v0 = vrot.slane %v1098_v55, 1  ;;  %v1103_v1 = vrot.slane %v1101_v56, 2  ;;  %v471_v2 = vshll.u32 %v3360_v58, 16  ;;  %v3366_v3 = vcombine.low %v895_v48, %v896_v49  ;;  %s3035_s13 = sshll.u32 %s3128_s12, 4  ;;  %s3036_s13 = int_to_ptr.vmem [resolvable:$false] %s3035_s13 }
  0x2c   : > { %v461_v4 = vor.u32 %v460_v60, %v456_v50  ;;  %v1108_v5 = vrot.slane %v1106_v62, 1  ;;  %v1111_v6 = vrot.slane %v1109_v63, 2  ;;  %v469_v7 = vor.u32 %v467_v59, %v465_v61  ;;  %s3037_s10 = scalar_lea.vmem %s3036_s13, 2048 }
  0x2d   : > { %2596 = vmatpush3.bf16.msra.mxu1 %v2971_v17  ;;  %v1104_v8 = vor.u32 %v1103_v1, %v1100_v0  ;;  %v473_v9 = vrot.slane %v471_v2, 1  ;;  %v1115_v10 = vshrl.u32 %v3366_v3, 16  ;;  %v1118_v11 = vshll.u32 %v3366_v3, 16  ;;  %v2983_v0 = vld [vmem:[%s3820_s2 + $0x20] sm:$0xff]  }
  0x2e   : > { %2692 = vmatpush3.bf16.msra.mxu0 %v2972_v19  ;;  %2597 = vmatprep.subr.bf16.mxu1 %v2973_v29  ;;  %v466_v13 = vsel %vm454_vm0, %v461_v4, %v465_v61  ;;  %v1112_v14 = vor.u32 %v1111_v6, %v1108_v5  ;;  %v2978_v19 = vld [vmem:[%s3820_s2 + $0x148] sm:$0xff]   ;;  %v394_v24 = vmul.bf16 %v3309_v26, %v375_v20  ;;  %v475_v27 = vshrl.u32 %v3360_v58, 16 }
  0x2f   : > { %2693 = vmatprep.subr.bf16.mxu0 %v2974_v41  ;;  %2599 = vmatprep.mubr.bf16.mxu1 %v466_v13  ;;  %v474_v15 = vsel %vm454_vm0, %v469_v7, %v473_v9  ;;  %v1117_v16 = vrot.slane %v1115_v10, 1  ;;  %v1120_v17 = vrot.slane %v1118_v11, 2  ;;  %v395_v25 = vmul.bf16 %v3309_v26, %v376_v21  ;;  %v2989_v21 = vld [vmem:[%s3820_s2 + $0x38] sm:$0xff]  }
  0x30   : > { %v1113_v18 = vsel %vm1096_vm1, %v1104_v8, %v1112_v14  ;;  %v897_v32 = vmul.bf16 %v3309_v26, %v888_v28  ;;  %v413_v36 = vmul.bf16 %v3309_v26, %v412_v33  ;;  %v1075_v47 = vmul.bf16 %v3309_v26, %v1074_v37  ;;  %v2984_v8 = vld [vmem:[%s3820_s2 + $0x160] sm:$0xff]   ;;  %v1424_v33 = vld [vmem:[%s3289_s20 + $0x14] sm:$0xf]  ;;  %v1425_v37 = vld [vmem:[%s3289_s20 + $0x18] sm:$0xf] }
  0x31   : > { %2598 = vmatpush3.bf16.msra.mxu1 %v2973_v29  ;;  %2695 = vmatprep.mubr.bf16.mxu0 %v1113_v18  ;;  %v3381_v22 = vor.u32 %v1120_v17, %v1117_v16  ;;  %v889_v29 = vld [vmem:[%s3289_s20 + $0x24] sm:$0xf]  ;;  %v3393_v31 = vcombine.low %v394_v24, %v395_v25  ;;  %v1267_v59 = vmul.bf16 %v3309_v26, %v1266_v52  ;;  %v2986_v17 = vld [vmem:[%s3820_s2 + $0x168] sm:$0xff]   ;;  %v2987_v18 = vld [vmem:[%s3820_s2 + $0x30] sm:$0xff]   ;;  %v941_v20 = vrot.slane %v3353_v54, 1 }
  0x32   : > { %2694 = vmatpush3.bf16.msra.mxu0 %v2974_v41  ;;  %2607 = vmatprep.subr.bf16.mxu1 %v2975_v53  ;;  %v898_v35 = vmul.bf16 %v3309_v26, %v889_v29  ;;  %v477_v41 = vor.u32 %v475_v27, %v473_v9  ;;  %v3411_v49 = vcombine.low %v413_v36, %v413_v36  ;;  %v2990_v25 = vld [vmem:[%s3820_s2 + $0x178] sm:$0xff]   ;;  %v725_v27 = vld [vmem:[%s3289_s20] sm:$0xe] }
  0x33   : > { %2703 = vmatprep.subr.bf16.mxu0 %v2976_v57  ;;  %v1122_v30 = vsel %vm1096_vm1, %v1112_v14, %v3381_v22  ;;  %v479_v44 = vshll.u32 %v3393_v31, 16  ;;  %v483_v45 = vshrl.u32 %v3393_v31, 16  ;;  %v3413_v51 = vcombine.low %v1075_v47, %v1075_v47  ;;  %v2991_v29 = vld [vmem:[%s3820_s2 + $0x80] sm:$0xff]  }
  0x34   : > { %2600 = vmatmul.mubr.bf16.vlgmr.msra.gmra.mrb[0].mxu1 %v474_v15  ;;  %v3409_v48 = vcombine.low %v897_v32, %v898_v35  ;;  %v2379_v5 = vcombine.low %v1267_v59, %v3328_v39  ;;  %v2985_v39 = vld [vmem:[%s3820_s2 + $0x28] sm:$0xff]   ;;  %v1292_v32 = vrot.slane %v3366_v3, 2  ;;  %v2992_v35 = vld [vmem:[%s3820_s2 + $0x180] sm:$0xff]   ;;  %v726_v36 = vmul.bf16 %v3309_v26, %v725_v27 }
  0x35   : > { %2608 = vmatpush3.bf16.msra.mxu1 %v2975_v53  ;;  %2696 = vmatmul.mubr.bf16.vlgmr.msra.gmra.mrb[0].mxu0 %v1122_v30  ;;  %v481_v50 = vrot.slane %v479_v44, 1  ;;  %v2982_v53 = vld [vmem:[%s3820_s2 + $0x158] sm:$0xff]   ;;  %v1133_v62 = vshrl.u32 %v3413_v51, 16  ;;  %v1136_v63 = vshll.u32 %v3413_v51, 16  ;;  %v1423_v30 = vld [vmem:[%s3289_s20 + $0x10] sm:$0xc]  ;;  %v3496_v47 = vmul.bf16 %v3309_v26, %v1424_v33 }
  0x36   : > { %2609 = vmatprep.subr.bf16.mxu1 %v2977_v12  ;;  %2704 = vmatpush3.bf16.msra.mxu0 %v2976_v57  ;;  %v1124_v55 = vshrl.u32 %v3409_v48, 16  ;;  %v1127_v56 = vshll.u32 %v3409_v48, 16  ;;  %v487_v57 = vshll.u32 %v3411_v49, 16  ;;  %v1289_v11 = vrot.slane %v2379_v5, 2  ;;  %v2999_v5 = vld [vmem:[%s3820_s2 + $0xa0] sm:$0xff]  }
  0x37   : > { %2705 = vmatprep.subr.bf16.mxu0 %v2978_v19  ;;  %v482_v60 = vsel %vm454_vm0, %v477_v41, %v481_v50  ;;  %v485_v61 = vor.u32 %v483_v45, %v481_v50  ;;  %v1135_v6 = vrot.slane %v1133_v62, 1  ;;  %v1138_v7 = vrot.slane %v1136_v63, 2  ;;  %v2996_v62 = vld [vmem:[%s3820_s2 + $0x190] sm:$0xff]   ;;  %v2997_v63 = vld [vmem:[%s3820_s2 + $0x98] sm:$0xff]  }
  0x38   : > { %v1126_v1 = vrot.slane %v1124_v55, 1  ;;  %v1129_v2 = vrot.slane %v1127_v56, 2  ;;  %v489_v4 = vrot.slane %v487_v57, 1  ;;  %2603 = vmatprep.mubr.bf16.mxu1 %v482_v60  ;;  %v1294_v41 = vrot.slane %v3409_v48, 2  ;;  %v2994_v55 = vld [vmem:[%s3820_s2 + $0x188] sm:$0xff]  }
  0x39   : > { %2610 = vmatpush3.bf16.msra.mxu1 %v2977_v12  ;;  %v1290_v12 = vrot.slane %v3353_v54, 2  ;;  %v1139_v13 = vor.u32 %v1138_v7, %v1135_v6  ;;  %v1432_v44 = vmul.bf16 %v3309_v26, %v1423_v30  ;;  %v2300_v45 = vcombine.low %v726_v36, %v3321_v34  ;;  %v2995_v34 = vld [vmem:[%s3820_s2 + $0x90] sm:$0xff]   ;;  %v3000_v7 = vld [vmem:[%s3820_s2 + $0x1a0] sm:$0xff]  }
  0x3a   : > { %2611 = vmatprep.subr.bf16.mxu1 %v2979_v23  ;;  %2706 = vmatpush3.bf16.msra.mxu0 %v2978_v19  ;;  %v1130_v9 = vor.u32 %v1129_v2, %v1126_v1  ;;  %v490_v10 = vsel %vm454_vm0, %v485_v61, %v489_v4  ;;  %v2988_v19 = vld [vmem:[%s3820_s2 + $0x170] sm:$0xff]   ;;  %v1434_v50 = vmul.bf16 %v3309_v26, %v1425_v37  ;;  %v749_v54 = vrot.slane %v3337_v43, 1  ;;  %v2998_v2 = vld [vmem:[%s3820_s2 + $0x198] sm:$0xff]   ;;  %v3007_v30 = vld [vmem:[%s3820_s2 + $0xc0] sm:$0xff]  }
  0x3b   : > { %2707 = vmatprep.subr.bf16.mxu0 %v2980_v38  ;;  %v1291_v16 = vsel %vm1288_vm2, %v1289_v11, %v1290_v12  ;;  %v1295_v56 = vsel %vm1288_vm2, %v1292_v32, %v1294_v41  ;;  %v748_v57 = vrot.slane %v2300_v45, 1  ;;  %v3513_v59 = vcombine.low %v1432_v44, %v3496_v47  ;;  %v1427_v11 = vld [vmem:[%s3289_s20 + $0x20] sm:$0xf]  ;;  %v3009_v45 = vld [vmem:[%s3820_s2 + $0xc8] sm:$0xff]  }
  0x3c   : > { %v1131_v14 = vsel %vm1096_vm1, %v3381_v22, %v1130_v9  ;;  %2604 = vmatmul.mubr.bf16.gmra.mrb[4].mxu1 %v490_v10  ;;  %v1140_v15 = vsel %vm1096_vm1, %v1130_v9, %v1139_v13  ;;  %v943_v22 = vrot.slane %v3366_v3, 1  ;;  %v2993_v3 = vld [vmem:[%s3820_s2 + $0x88] sm:$0xff]   ;;  %v1296_v61 = vrot.slane %v3413_v51, 2  ;;  %v3003_v10 = vld [vmem:[%s3820_s2 + $0xb0] sm:$0xff]   ;;  %v1979_v36 = vld [vmem:[%s3585_s16] sm:$0xff] }
  0x3d   : > { %2612 = vmatpush3.bf16.msra.mxu1 %v2979_v23  ;;  %2699 = vmatprep.mubr.bf16.mxu0 %v1131_v14  ;;  %v945_v23 = vrot.slane %v3409_v48, 1  ;;  %v1481_v1 = vrot.slane %v3513_v59, 2  ;;  %v3002_v9 = vld [vmem:[%s3820_s2 + $0x1a8] sm:$0xff]   ;;  %v1436_v13 = vmul.bf16 %v3309_v26, %v1427_v11  ;;  %v3008_v44 = vld [vmem:[%s3820_s2 + $0x1c0] sm:$0xff]   ;;  %v1985_v11 = vld [vmem:[%s3585_s16 + $0x30] sm:$0xff] }
  0x3e   : > { %2613 = vmatprep.subr.bf16.mxu1 %v2981_v40  ;;  %2708 = vmatpush3.bf16.msra.mxu0 %v2980_v38  ;;  %v3465_v24 = vsel %vm747_vm3, %v941_v20, %v943_v22  ;;  %v3127_v38 = vmov 0   ;;  %v1297_v4 = vsel %vm1288_vm2, %v1294_v41, %v1296_v61  ;;  %v1429_v14 = vld [vmem:[%s3289_s20 + $0x28] sm:$0xf]  ;;  %v1982_v41 = vld [vmem:[%s3585_s16 + $0x18] sm:$0xff]  ;;  %v3027_v48 = vld [vmem:[%s3820_s2 + $0x220] sm:$0xff]  }
  0x3f   : > { %2709 = vmatprep.subr.bf16.mxu0 %v2982_v53  ;;  %2700 = vmatmul.mubr.bf16.gmra.mrb[4].mxu0 %v1140_v15  ;;  %v3474_v28 = vsel %vm747_vm3, %v943_v22, %v945_v23  ;;  %v1430_v15 = vld [vmem:[%s3289_s20 + $0x2c] sm:$0xf] }
  0x40   : > { %2623 = vmatprep.mubr.bf16.mxu1 %v3335_v42  ;;  %2719 = vmatprep.mubr.bf16.mxu0 %v1291_v16  ;;  %v940_v42 = vrot.slane %v3342_v46, 1  ;;  %v1807_v16 = vld [vmem:[%s3289_s20 + $0x10] sm:$0x8]  ;;  %v1984_v61 = vld [vmem:[%s3585_s16 + $0x28] sm:$0xff] }
  0x41   : > { %2614 = vmatpush3.bf16.msra.mxu1 %v2981_v40  ;;  %2958 = vset.pattern.permute.xlu1 %v3127_v38  ;;  %v1426_v40 = vld [vmem:[%s3289_s20 + $0x1c] sm:$0xf] }
  0x42   : > { %2615 = vmatprep.subr.bf16.mxu1 %v2983_v0  ;;  %2710 = vmatpush3.bf16.msra.mxu0 %v2982_v53  ;;  %v3461_v46 = vsel %vm747_vm3, %v940_v42, %v941_v20  ;;  %v1435_v52 = vmul.bf16 %v3309_v26, %v1426_v40  ;;  %v1293_v53 = vsel %vm1288_vm2, %v1290_v12, %v1292_v32  ;;  %v1428_v12 = vld [vmem:[%s3289_s20 + $0x24] sm:$0xf]  ;;  %v1431_v32 = vld [vmem:[%s3289_s20 + $0x30] sm:$0x3] }
  0x43   : > { %2711 = vmatprep.subr.bf16.mxu0 %v2984_v8  ;;  %2957 = vset.pattern.permute.xlu0 %v3127_v38  ;;  %v1808_v42 = vmul.bf16 %v3309_v26, %v1807_v16  ;;  %v1439_v20 = vmul.bf16 %v3309_v26, %v1430_v15  ;;  %v3016_v15 = vld [vmem:[%s3820_s2 + $0x1e0] sm:$0xff]   ;;  %v3017_v16 = vld [vmem:[%s3820_s2 + $0xe8] sm:$0xff]  }
  0x44   : > { %v3515_v60 = vcombine.low %v1434_v50, %v1435_v52  ;;  %1990 = vperm.xlu0 %2957, %v1979_v36   ;;  %v1642_v52 = vshll.u32 %v3513_v59, 16 }
  0x45   : > { %2616 = vmatpush3.bf16.msra.mxu1 %v2983_v0  ;;  %v750_v0 = vsel %vm747_vm3, %v748_v57, %v749_v54  ;;  %v755_v57 = vrot.slane %v3411_v49, 1 }
  0x46   : > { %2617 = vmatprep.subr.bf16.mxu1 %v2985_v39  ;;  %2712 = vmatpush3.bf16.msra.mxu0 %v2984_v8  ;;  %v1482_v51 = vrot.slane %v3515_v60, 2  ;;  %v3001_v8 = vld [vmem:[%s3820_s2 + $0xa8] sm:$0xff]   ;;  %v1831_v22 = vrot.slane %v3515_v60, 3 }
  0x47   : > { %2713 = vmatprep.subr.bf16.mxu0 %v2986_v17 }
  0x48   : > { %v1483_v6 = vsel %vm1288_vm2, %v1481_v1, %v1482_v51 }
  0x49   : > { %2618 = vmatpush3.bf16.msra.mxu1 %v2985_v39  ;;  %v1437_v39 = vmul.bf16 %v3309_v26, %v1428_v12 }
  0x4a   : > { %2619 = vmatprep.subr.bf16.mxu1 %v2987_v18  ;;  %2714 = vmatpush3.bf16.msra.mxu0 %v2986_v17  ;;  %v3004_v17 = vld [vmem:[%s3820_s2 + $0x1b0] sm:$0xff]  }
  0x4b   : > { %2715 = vmatprep.subr.bf16.mxu0 %v2988_v19  ;;  %v3573_v27 = vcombine.low %v1436_v13, %v1437_v39  ;;  %v3014_v13 = vld [vmem:[%s3820_s2 + $0x1d8] sm:$0xff]   ;;  %v3015_v39 = vld [vmem:[%s3820_s2 + $0xe0] sm:$0xff]  }
  0x4d   : > { %2620 = vmatpush3.bf16.msra.mxu1 %v2987_v18  ;;  %v3005_v18 = vld [vmem:[%s3820_s2 + $0xb8] sm:$0xff]  }
  0x4e   : > { %2621 = vmatprep.subr.bf16.mxu1 %v2989_v21  ;;  %2716 = vmatpush3.bf16.msra.mxu0 %v2988_v19  ;;  %v1438_v19 = vmul.bf16 %v3309_v26, %v1429_v14 }
  0x4f   : > { %2717 = vmatprep.subr.bf16.mxu0 %v2990_v25 }
  0x50   : > { %v3590_v37 = vcombine.low %v1438_v19, %v1439_v20  ;;  %v1659_v19 = vshll.u32 %v3573_v27, 16 }
  0x51   : > { %2622 = vmatpush3.bf16.msra.mxu1 %v2989_v21  ;;  %v2458_v21 = vcombine.low %v1808_v42, %v3496_v47  ;;  %v1639_v47 = vshrl.u32 %v3513_v59, 16  ;;  %v3010_v59 = vld [vmem:[%s3820_s2 + $0x1c8] sm:$0xff]   ;;  %v1656_v42 = vshrl.u32 %v3573_v27, 16 }
  0x52   : > { %2631 = vmatprep.subr.bf16.mxu1 %v2991_v29  ;;  %2718 = vmatpush3.bf16.msra.mxu0 %v2990_v25  ;;  %v751_v25 = vrot.slane %v3360_v58, 1  ;;  %v1486_v50 = vrot.slane %v3590_v37, 2 }
  0x53   : > { %2727 = vmatprep.subr.bf16.mxu0 %v2992_v35  ;;  %v1830_v33 = vrot.slane %v2458_v21, 3  ;;  %v3020_v21 = vld [vmem:[%s3820_s2 + $0x1f0] sm:$0xff]  }
  0x54   : > { %2624 = vmatmul.mubr.bf16.vlgmr.msra.gmra.mrb[0].mxu1 %v3337_v43  ;;  %v752_v40 = vsel %vm747_vm3, %v749_v54, %v751_v25 }
  0x55   : > { %2632 = vmatpush3.bf16.msra.mxu1 %v2991_v29  ;;  %2627 = vmatprep.mubr.bf16.mxu1 %v3360_v58  ;;  %v3006_v29 = vld [vmem:[%s3820_s2 + $0x1b8] sm:$0xff]   ;;  %v753_v58 = vrot.slane %v3393_v31, 1  ;;  %v3595_v38 = vsel %vm1829_vm4, %v1830_v33, %v1831_v22  ;;  %v1658_v33 = vrot.slane %v1656_v42, 2  ;;  %v2468_v42 = vld [vmem:[%s3823_s5] ss:$0 sm:$0xff] }
  0x56   : > { %2633 = vmatprep.subr.bf16.mxu1 %v2993_v3  ;;  %2720 = vmatmul.mubr.bf16.vlgmr.msra.gmra.mrb[0].mxu0 %v1293_v53  ;;  %v1647_v53 = vshrl.u32 %v3515_v60, 16 }
  0x57   : > { %2728 = vmatpush3.bf16.msra.mxu0 %v2992_v35  ;;  %2723 = vmatprep.mubr.bf16.mxu0 %v1295_v56  ;;  %v1981_v35 = vld [vmem:[%s3585_s16 + $0x10] sm:$0xff]  ;;  %v754_v43 = vsel %vm747_vm3, %v751_v25, %v753_v58  ;;  %v3021_v25 = vld [vmem:[%s3820_s2 + $0xf8] sm:$0xff]  }
  0x58   : > { %2729 = vmatprep.subr.bf16.mxu0 %v2994_v55  ;;  %2000 = vperm.xlu1 %2958, %v1981_v35   ;;  %v1649_v1 = vrot.slane %v1647_v53, 2 }
  0x59   : > { %2634 = vmatpush3.bf16.msra.mxu1 %v2993_v3  ;;  %v1440_v3 = vmul.bf16 %v3309_v26, %v1431_v32  ;;  %v1668_v32 = vshll.u32 %v3590_v37, 16 }
  0x5a   : > { %2635 = vmatprep.subr.bf16.mxu1 %v2995_v34 }
  0x5b   : > { %2730 = vmatpush3.bf16.msra.mxu0 %v2994_v55  ;;  %v1650_v55 = vshll.u32 %v3515_v60, 16  ;;  %v2408_v54 = vcombine.low %v1440_v3, %v1440_v3 }
  0x5c   : > { %2628 = vmatmul.mubr.bf16.gmra.mrb[4].mxu1 %v3393_v31  ;;  %2731 = vmatprep.subr.bf16.mxu0 %v2996_v62  ;;  %v1484_v31 = vrot.slane %v3573_v27, 2 }
  0x5d   : > { %2636 = vmatpush3.bf16.msra.mxu1 %v2995_v34  ;;  %2647 = vmatprep.mubr.bf16.mxu1 %v750_v0  ;;  %v1980_v34 = vld [vmem:[%s3585_s16 + $0x8] sm:$0xff]  ;;  %v1644_v0 = vrot.slane %v1642_v52, 3 }
  0x5e   : > { %2637 = vmatprep.subr.bf16.mxu1 %v2997_v63  ;;  %2724 = vmatmul.mubr.bf16.gmra.mrb[4].mxu0 %v1297_v4  ;;  %v1485_v56 = vsel %vm1288_vm2, %v1482_v51, %v1484_v31  ;;  %v1487_v49 = vsel %vm1288_vm2, %v1484_v31, %v1486_v50  ;;  %v1652_v51 = vrot.slane %v1650_v55, 3  ;;  %v756_v4 = vsel %vm747_vm3, %v753_v58, %v755_v57  ;;  %v3023_v31 = vld [vmem:[%s3820_s2 + $0x200] sm:$0xff]   ;;  %v3025_v57 = vld [vmem:[%s3820_s2 + $0x210] sm:$0xff]  }
  0x5f   : > { %2732 = vmatpush3.bf16.msra.mxu0 %v2996_v62  ;;  %2743 = vmatprep.mubr.bf16.mxu0 %v1483_v6  ;;  %v3011_v62 = vld [vmem:[%s3820_s2 + $0xd0] sm:$0xff]   ;;  %v1986_v6 = vld [vmem:[%s3585_s16 + $0x38] sm:$0xff]  ;;  %v1661_v58 = vrot.slane %v1659_v19, 3 }
  0x60   : > { %2733 = vmatprep.subr.bf16.mxu0 %v2998_v2  ;;  %2005 = vperm.xlu1 %2958, %v1982_v41   ;;  %v1670_v41 = vrot.slane %v1668_v32, 3 }
  0x61   : > { %2638 = vmatpush3.bf16.msra.mxu1 %v2997_v63  ;;  %v1641_v63 = vrot.slane %v1639_v47, 2  ;;  %1995 = vperm.xlu0 %2957, %v1980_v34   ;;  %v3024_v47 = vld [vmem:[%s3820_s2 + $0x208] sm:$0xff]  }
  0x62   : > { %2639 = vmatprep.subr.bf16.mxu1 %v2999_v5 }
  0x63   : > { %2734 = vmatpush3.bf16.msra.mxu0 %v2998_v2  ;;  %v1983_v2 = vld [vmem:[%s3585_s16 + $0x20] sm:$0xff]  ;;  %s2882_s16 = smul.u32 40, %s3113_s28  ;;  %s3745_s28 = scalar_lea.vmem [#allocation2], %s3738_s21 }
  0x64   : > { %2735 = vmatprep.subr.bf16.mxu0 %v3000_v7  ;;  %2015 = vperm.xlu1 %2958, %v1984_v61  }
  0x65   : > { %2640 = vmatpush3.bf16.msra.mxu1 %v2999_v5  ;;  %v1488_v5 = vrot.slane %v2408_v54, 2  ;;  %2010 = vperm.xlu0 %2957, %v1983_v2   ;;  %v1835_v54 = vrot.slane %v3590_v37, 3  ;;  %s3742_s29 = sadd.s32 %s2882_s16, %s2471_s18 }
  0x66   : > { %2641 = vmatprep.subr.bf16.mxu1 %v3001_v8  ;;  %s2472_s27 = sshll.u32 %s3742_s29, 7 }
  0x67   : > { %2736 = vmatpush3.bf16.msra.mxu0 %v3000_v7  ;;  %v3012_v7 = vld [vmem:[%s3820_s2 + $0x1d0] sm:$0xff]   ;;  %v1489_v12 = vsel %vm1288_vm2, %v1486_v50, %v1488_v5  ;;  %s3757_s11 = scalar_lea.hbm %s3825_s7, %s2472_s27 }
  0x68   : > { %2737 = vmatprep.subr.bf16.mxu0 %v3002_v9  ;;  %2025 = vperm.xlu1 %2958, %v1986_v6  }
  0x69   : > { %2642 = vmatpush3.bf16.msra.mxu1 %v3001_v8  ;;  %v3013_v8 = vld [vmem:[%s3820_s2 + $0xd8] sm:$0xff]   ;;  %2020 = vperm.xlu0 %2957, %v1985_v11  }
  0x6a   : > { %2643 = vmatprep.subr.bf16.mxu1 %v3003_v10 }
  0x6b   : > { %2738 = vmatpush3.bf16.msra.mxu0 %v3002_v9  ;;  %v1645_v9 = vor.u32 %v1644_v0, %v1641_v63  ;;  %v3030_v63 = vld [vmem:[%s3820_s2 + $0x238] sm:$0xff]  }
  0x6c   : > { %2739 = vmatprep.subr.bf16.mxu0 %v3004_v17 }
  0x6d   : > { %2644 = vmatpush3.bf16.msra.mxu1 %v3003_v10  ;;  %v3637_v10 = vor.u32 %v1652_v51, %v1649_v1 }
  0x6e   : > { %2645 = vmatprep.subr.bf16.mxu1 %v3005_v18 }
  0x6f   : > { %2740 = vmatpush3.bf16.msra.mxu0 %v3004_v17  ;;  %v1654_v14 = vsel %vm1637_vm5, %v1645_v9, %v3637_v10  ;;  %v3019_v17 = vld [vmem:[%s3820_s2 + $0xf0] sm:$0xff]  }
  0x70   : > { %2741 = vmatprep.subr.bf16.mxu0 %v3006_v29 }
  0x71   : > { %2646 = vmatpush3.bf16.msra.mxu1 %v3005_v18  ;;  %v1615_v18 = vld [vmem:[%s3289_s20 + $0x30] sm:$0x7] }
  0x72   : > { %2655 = vmatprep.subr.bf16.mxu1 %v3007_v30  ;;  %v1616_v20 = vmul.bf16 %v3309_v26, %v1615_v18 }
  0x73   : > { %2742 = vmatpush3.bf16.msra.mxu0 %v3006_v29  ;;  %v890_v29 = vld [vmem:[%s3289_s20 + $0x28] sm:$0x1]  ;;  %s2113_s20 = sshll.u32 %s3745_s28, 4  ;;  %s3759_s20 = int_to_ptr.vmem [resolvable:$true] %s2113_s20 }
  0x74   : > { %2648 = vmatmul.mubr.bf16.vlgmr.msra.gmra.mrb[0].mxu1 %v752_v40  ;;  %2751 = vmatprep.subr.bf16.mxu0 %v3008_v44  ;;  %v899_v35 = vmul.bf16 %v3309_v26, %v890_v29  ;;  %v3676_v36 = vcombine.low %v1616_v20, %v1616_v20  ;;  %v3022_v40 = vld [vmem:[%s3820_s2 + $0x1f8] sm:$0xff]   ;;  %v2467_v20 = vld [vmem:[%s357_s9] ss:$0 sm:$0xff]  ;;  %s3766_s9 = scalar_lea.sflag [#allocation3], %s340_s22  ;;  %s3031_s17 = scalar_lea.vmem %s3759_s20, 1024 }
  0x75   : > { %2656 = vmatpush3.bf16.msra.mxu1 %v3007_v30  ;;  %2651 = vmatprep.mubr.bf16.mxu1 %v754_v43  ;;  %v1665_v30 = vshrl.u32 %v3590_v37, 16  ;;  %v3029_v37 = vld [vmem:[%s3820_s2 + $0x230] sm:$0xff]   ;;  %p3032_p0 = scmp.ne.s32.totalorder %s3759_s20, %s3031_s17  ;;  %p3038_p4 = scmp.lt.s32.totalorder %s3759_s20, %s3036_s13 }
  0x76   : > { %2657 = vmatprep.subr.bf16.mxu1 %v3009_v45  ;;  %2744 = vmatmul.mubr.bf16.vlgmr.msra.gmra.mrb[0].mxu0 %v1485_v56  ;;  %v1674_v26 = vshrl.u32 %v3676_v36, 16  ;;  %v1677_v43 = vshll.u32 %v3676_v36, 16  ;;  %p3039_p5 = scmp.lt.s32.totalorder %s3037_s10, %s3031_s17 }
  0x77   : > { %2752 = vmatpush3.bf16.msra.mxu0 %v3008_v44  ;;  %2747 = vmatprep.mubr.bf16.mxu0 %v1487_v49  ;;  %v1667_v3 = vrot.slane %v1665_v30, 2  ;;  %v1662_v44 = vor.u32 %v1661_v58, %v1658_v33  ;;  %p3033_p1 = pnand %p3032_p0, %p3222_p3 }
  0x78   : > { %2753 = vmatprep.subr.bf16.mxu0 %v3010_v59  ;;  %v1676_v55 = vrot.slane %v1674_v26, 2  ;;  %v1679_v34 = vrot.slane %v1677_v43, 3  ;;  %v2469_v43 = vld [vmem:[%s3824_s6] ss:$0 sm:$0xff]  ;;  %p3040_p6 = por %p3039_p5, %p3038_p4 }
  0x79   : > { %2658 = vmatpush3.bf16.msra.mxu1 %v3009_v45  ;;  %v2329_v45 = vcombine.low %v899_v35, %v899_v35  ;;  %v1671_v50 = vor.u32 %v1670_v41, %v1667_v3  ;;  %v1663_v52 = vsel %vm1637_vm5, %v3637_v10, %v1662_v44  ;;  %p3034_p2 = pneg %p3033_p1 }
  0x7a   : > { %2659 = vmatprep.subr.bf16.mxu1 %v3011_v62 }
  0x7b   : > { %2754 = vmatpush3.bf16.msra.mxu0 %v3010_v59  ;;  %v947_v53 = vrot.slane %v2329_v45, 1  ;;  %v1672_v56 = vsel %vm1637_vm5, %v1662_v44, %v1671_v50  ;;  %v1680_v59 = vor.u32 %v1679_v34, %v1676_v55  ;;  %p3041_p7 = pnand %p3040_p6, %p3034_p2 }
  0x7c   : > { %2652 = vmatmul.mubr.bf16.gmra.mrb[4].mxu1 %v756_v4  ;;  %2755 = vmatprep.subr.bf16.mxu0 %v3012_v7 }
  0x7d   : > { %2660 = vmatpush3.bf16.msra.mxu1 %v3011_v62  ;;  %2671 = vmatprep.mubr.bf16.mxu1 %v3461_v46  ;;  %v3018_v46 = vld [vmem:[%s3820_s2 + $0x1e8] sm:$0xff]   ;;  %v948_v61 = vsel %vm747_vm3, %v945_v23, %v947_v53 }
  0x7e   : > { %2661 = vmatprep.subr.bf16.mxu1 %v3013_v8  ;;  %2748 = vmatmul.mubr.bf16.gmra.mrb[4].mxu0 %v1489_v12  ;;  %v3028_v23 = vld [vmem:[%s3820_s2 + $0x228] sm:$0xff]  }
  0x7f   : > { %2756 = vmatpush3.bf16.msra.mxu0 %v3012_v7  ;;  %2767 = vmatprep.mubr.bf16.mxu0 %v1654_v14 }
  0x80   : > { %2757 = vmatprep.subr.bf16.mxu0 %v3014_v13 }
  0x81   : > { %2662 = vmatpush3.bf16.msra.mxu1 %v3013_v8 }
  0x82   : > { %2663 = vmatprep.subr.bf16.mxu1 %v3015_v39 }
  0x83   : > { %2758 = vmatpush3.bf16.msra.mxu0 %v3014_v13 }
  0x84   : > { %2759 = vmatprep.subr.bf16.mxu0 %v3016_v15 }
  0x85   : > { %2664 = vmatpush3.bf16.msra.mxu1 %v3015_v39 }
  0x86   : > { %2665 = vmatprep.subr.bf16.mxu1 %v3017_v16 }
  0x87   : > { %2760 = vmatpush3.bf16.msra.mxu0 %v3016_v15 }
  0x88   : > { %2761 = vmatprep.subr.bf16.mxu0 %v3018_v46 }
  0x89   : > { %2666 = vmatpush3.bf16.msra.mxu1 %v3017_v16 }
  0x8a   : > { %2667 = vmatprep.subr.bf16.mxu1 %v3019_v17 }
  0x8b   : > { %2762 = vmatpush3.bf16.msra.mxu0 %v3018_v46 }
  0x8c   : > { %2763 = vmatprep.subr.bf16.mxu0 %v3020_v21 }
  0x8d   : > { %2668 = vmatpush3.bf16.msra.mxu1 %v3019_v17 }
  0x8e   : > { %2669 = vmatprep.subr.bf16.mxu1 %v3021_v25 }
  0x8f   : > { %2764 = vmatpush3.bf16.msra.mxu0 %v3020_v21 }
  0x90   : > { %2765 = vmatprep.subr.bf16.mxu0 %v3022_v40 }
  0x91   : > { %2670 = vmatpush3.bf16.msra.mxu1 %v3021_v25 }
  0x92   : > { %2799 = vmatprep.subr.bf16.mxu1 %v3023_v31 }
  0x93   : > { %2766 = vmatpush3.bf16.msra.mxu0 %v3022_v40 }
  0x94   : > { %2672 = vmatmul.mubr.bf16.vlgmr.msra.gmra.mrb[0].mxu1 %v3465_v24  ;;  %2775 = vmatprep.subr.bf16.mxu0 %v3023_v31  ;;  %v1833_v24 = vrot.slane %v3573_v27, 3  ;;  %v1681_v27 = vsel %vm1637_vm5, %v1671_v50, %v1680_v59 }
  0x95   : > { %2807 = vmatpush3.bf16.msra.mxu1 %v3023_v31  ;;  %2675 = vmatprep.mubr.bf16.mxu1 %v3474_v28  ;;  %v3026_v28 = vld [vmem:[%s3820_s2 + $0x218] sm:$0xff]  }
  0x96   : > { %2800 = vmatprep.subr.bf16.mxu1 %v3024_v47  ;;  %2768 = vmatmul.mubr.bf16.vlgmr.msra.gmra.mrb[0].mxu0 %v1663_v52  ;;  %v1836_v62 = vsel %vm1829_vm4, %v1833_v24, %v1835_v54  ;;  %v1834_v0 = vsel %vm1829_vm4, %v1831_v22, %v1833_v24 }
  0x97   : > { %2776 = vmatpush3.bf16.msra.mxu0 %v3023_v31  ;;  %2771 = vmatprep.mubr.bf16.mxu0 %v1672_v56 }
  0x98   : > { %2777 = vmatprep.subr.bf16.mxu0 %v3024_v47 }
  0x99   : > { %2808 = vmatpush3.bf16.msra.mxu1 %v3024_v47 }
  0x9a   : > { %2801 = vmatprep.subr.bf16.mxu1 %v3025_v57 }
  0x9b   : > { %2778 = vmatpush3.bf16.msra.mxu0 %v3024_v47 }
  0x9c   : > { %2676 = vmatmul.mubr.bf16.gmra.mrb[4].mxu1 %v948_v61  ;;  %2779 = vmatprep.subr.bf16.mxu0 %v3025_v57 }
  0x9d   : > { %2809 = vmatpush3.bf16.msra.mxu1 %v3025_v57  ;;  %2795 = vmatprep.mubr.bf16.mxu1 %v1836_v62 }
  0x9e   : > { %2802 = vmatprep.subr.bf16.mxu1 %v3026_v28  ;;  %2772 = vmatmul.mubr.bf16.gmra.mrb[4].mxu0 %v1681_v27 }
  0x9f   : > { %2780 = vmatpush3.bf16.msra.mxu0 %v3025_v57  ;;  %2791 = vmatprep.mubr.bf16.mxu0 %v3595_v38  ;;  %v1837_v38 = vrot.slane %v3676_v36, 3 }
  0xa0   : > { %2781 = vmatprep.subr.bf16.mxu0 %v3026_v28 }
  0xa1   : > { %2810 = vmatpush3.bf16.msra.mxu1 %v3026_v28  ;;  %v1838_v49 = vsel %vm1829_vm4, %v1835_v54, %v1837_v38 }
  0xa2   : > { %2803 = vmatprep.subr.bf16.mxu1 %v3027_v48 }
  0xa3   : > { %2782 = vmatpush3.bf16.msra.mxu0 %v3026_v28 }
  0xa4   : > { %2783 = vmatprep.subr.bf16.mxu0 %v3027_v48 }
  0xa5   : > { %2811 = vmatpush3.bf16.msra.mxu1 %v3027_v48 }
  0xa6   : > { %2804 = vmatprep.subr.bf16.mxu1 %v3028_v23 }
  0xa7   : > { %2784 = vmatpush3.bf16.msra.mxu0 %v3027_v48 }
  0xa8   : > { %2785 = vmatprep.subr.bf16.mxu0 %v3028_v23 }
  0xa9   : > { %2812 = vmatpush3.bf16.msra.mxu1 %v3028_v23 }
  0xaa   : > { %2805 = vmatprep.subr.bf16.mxu1 %v3029_v37 }
  0xab   : > { %2786 = vmatpush3.bf16.msra.mxu0 %v3028_v23 }
  0xac   : > { %2787 = vmatprep.subr.bf16.mxu0 %v3029_v37 }
  0xad   : > { %2813 = vmatpush3.bf16.msra.mxu1 %v3029_v37 }
  0xae   : > { %2806 = vmatprep.subr.bf16.mxu1 %v3030_v63 }
  0xaf   : > { %2788 = vmatpush3.bf16.msra.mxu0 %v3029_v37 }
  0xb0   : > { %2789 = vmatprep.subr.bf16.mxu0 %v3030_v63 }
  0xb1   : > { %2814 = vmatpush3.bf16.msra.mxu1 %v3030_v63 }
  0xb3   : > { %2790 = vmatpush3.bf16.msra.mxu0 %v3030_v63 }
  0xb4   : > { %2796 = vmatmul.mubr.bf16.vlgmr.msra.gmra.mrb[8].mxu1 %v1838_v49 }
  0xb6   : > { %2792 = vmatmul.mubr.bf16.vlgmr.msra.gmra.mrb[0].mxu0 %v1834_v0 }
  0xc3   : > { %v1991_v39 = vpop.permute.xlu0 %1990 }
  0xc4   : > { %v2034_v32 = vmul.f32 %v2468_v42, %v1991_v39 }
  0xd7   : > { %v2001_v22 = vpop.permute.xlu1 %2000 }
  0xd8   : > { %v2036_v30 = vmul.f32 %v2468_v42, %v2001_v22 }
  0xdf   : > { %v2006_v46 = vpop.permute.xlu1 %2005 }
  0xe0   : > { %v1996_v16 = vpop.permute.xlu0 %1995  ;;  %v2037_v36 = vmul.f32 %v2468_v42, %v2006_v46 }
  0xe1   : > { %v2035_v44 = vmul.f32 %v2468_v42, %v1996_v16 }
  0xe3   : > { %v2016_v18 = vpop.permute.xlu1 %2015 }
  0xe4   : > { %v2011_v17 = vpop.permute.xlu0 %2010  ;;  %v2039_v57 = vmul.f32 %v2468_v42, %v2016_v18 }
  0xe5   : > { %v2038_v45 = vmul.f32 %v2468_v42, %v2011_v17 }
  0xe7   : > { %v2026_v33 = vpop.permute.xlu1 %2025 }
  0xe8   : > { %v2021_v19 = vpop.permute.xlu0 %2020  ;;  %v2041_v52 = vmul.f32 %v2468_v42, %v2026_v33 }
  0xe9   : > { %v2040_v40 = vmul.f32 %v2468_v42, %v2021_v19 }
 0x167   : > { %v2673_v1 = vpop.f32.mrb[0].mxu1 }
 0x168   : > { %v1035_v51 = vpop.f32.mrb[1].mxu1 }
 0x169   : > { %v2674_v2 = vpop.f32.mrb[2].mxu1 }
 0x16a   : > { %v1038_v4 = vpop.f32.mrb[3].mxu1 }
 0x16f   : > { %v2677_v5 = vpop.f32.mrb[4].mxu1 }
 0x170   : > { %v1051_v6 = vpop.f32.mrb[5].mxu1 }
 0x171   : > { %v2678_v7 = vpop.f32.mrb[6].mxu1  ;;  %v2773_v9 = vpop.f32.mrb[4].mxu0 }
 0x172   : > { %v1054_v8 = vpop.f32.mrb[7].mxu1  ;;  %v2819_v10 = vadd.f32 %v2773_v9, %v2677_v5  ;;  %v1784_v11 = vpop.f32.mrb[5].mxu0 }
 0x173   : > { %v2821_v12 = vadd.f32 %v1784_v11, %v1051_v6  ;;  %v2774_v13 = vpop.f32.mrb[6].mxu0 }
 0x174   : > { %v2823_v14 = vadd.f32 %v2774_v13, %v2678_v7  ;;  %v1787_v60 = vpop.f32.mrb[7].mxu0 }
 0x175   : > { %v2825_v15 = vadd.f32 %v1787_v60, %v1054_v8 }
 0x187   : > { %v2797_v21 = vpop.f32.mrb[8].mxu1 }
 0x188   : > { %v2820_v25 = vadd.f32 %v2819_v10, %v2797_v21  ;;  %v1941_v29 = vpop.f32.mrb[9].mxu1 }
 0x189   : > { %v2822_v58 = vadd.f32 %v2821_v12, %v1941_v29  ;;  %v2798_v35 = vpop.f32.mrb[10].mxu1  ;;  %v2793_v26 = vpop.f32.mrb[0].mxu0 }
 0x18a   : > { %v1977_v31 = vmul.f32 %v2820_v25, %v2467_v20  ;;  %v2824_v3 = vadd.f32 %v2823_v14, %v2798_v35  ;;  %v1944_v41 = vpop.f32.mrb[11].mxu1  ;;  %v2815_v53 = vadd.f32 %v2793_v26, %v2673_v1  ;;  %v1925_v34 = vpop.f32.mrb[1].mxu0 }
 0x18b   : > { %v1975_v47 = vmul.f32 %v2822_v58, %v2467_v20  ;;  %v2826_v50 = vadd.f32 %v2825_v15, %v1944_v41  ;;  %v2816_v24 = vadd.f32 %v1925_v34, %v1035_v51  ;;  %v2794_v61 = vpop.f32.mrb[2].mxu0 }
 0x18c   : > { %v2048_v55 = vadd.f32 %v2040_v40, %v1977_v31  ;;  %v1978_v56 = vmul.f32 %v2824_v3, %v2467_v20  ;;  %v1973_v28 = vmul.f32 %v2815_v53, %v2467_v20  ;;  %v2817_v27 = vadd.f32 %v2794_v61, %v2674_v2  ;;  %v1928_v23 = vpop.f32.mrb[3].mxu0 }
 0x18d   : > { %v2046_v54 = vadd.f32 %v2038_v45, %v1975_v47  ;;  %v1976_v59 = vmul.f32 %v2826_v50, %v2467_v20  ;;  %v1971_v37 = vmul.f32 %v2816_v24, %v2467_v20  ;;  %v2818_v38 = vadd.f32 %v1928_v23, %v1038_v4 }
 0x18e   : > { %v2063_v62 = vadd.f32 %v2469_v43, %v2048_v55  ;;  %v2049_v48 = vadd.f32 %v2041_v52, %v1978_v56  ;;  %v2044_v0 = vadd.f32 %v2036_v30, %v1973_v28  ;;  %v1974_v5 = vmul.f32 %v2817_v27, %v2467_v20 }
 0x18f   : > { %v2061_v63 = vadd.f32 %v2469_v43, %v2046_v54  ;;  %v2047_v49 = vadd.f32 %v2039_v57, %v1976_v59  ;;  %v2042_v51 = vadd.f32 %v2034_v32, %v1971_v37  ;;  %v1972_v10 = vmul.f32 %v2818_v38, %v2467_v20 }
 0x190   : > { %vm2071_vm6 = vcmp.ge.f32.partialorder %v2063_v62, 0.0  ;;  %v2079_v1 = vmul.f32 0.2, %v2063_v62  ;;  %v2064_v7 = vadd.f32 %v2469_v43, %v2049_v48  ;;  %v2059_v8 = vadd.f32 %v2469_v43, %v2044_v0 }
 0x191   : > { %vm2069_vm7 = vcmp.ge.f32.partialorder %v2061_v63, 0.0  ;;  %v2077_v6 = vmul.f32 0.2, %v2061_v63  ;;  %v2045_v2 = vadd.f32 %v2037_v36, %v1974_v5  ;;  %v2057_v4 = vadd.f32 %v2469_v43, %v2042_v51 }
 0x192   : > { %v2087_v9 = vsel %vm2071_vm6, %v2063_v62, %v2079_v1  ;;  %vm2072_vm8 = vcmp.ge.f32.partialorder %v2064_v7, 0.0  ;;  %v2080_v12 = vmul.f32 0.2, %v2064_v7  ;;  %vm2067_vm9 = vcmp.ge.f32.partialorder %v2059_v8, 0.0 }
 0x193   : > { %2095 = vst [vmem:[%s3745_s28 + $0x30] sm:$0xff] %v2087_v9  ;;  %v2085_v11 = vsel %vm2069_vm7, %v2061_v63, %v2077_v6  ;;  %v2075_v13 = vmul.f32 0.2, %v2059_v8  ;;  %v2060_v39 = vadd.f32 %v2469_v43, %v2045_v2  ;;  %v2043_v14 = vadd.f32 %v2035_v44, %v1972_v10 }
 0x194   : > { %2093 = vst [vmem:[%s3745_s28 + $0x20] sm:$0xff] %v2085_v11  ;;  %vm2065_vm10 = vcmp.ge.f32.partialorder %v2057_v4, 0.0  ;;  %v2073_v60 = vmul.f32 0.2, %v2057_v4  ;;  %v2088_v15 = vsel %vm2072_vm8, %v2064_v7, %v2080_v12  ;;  %v2062_v22 = vadd.f32 %v2469_v43, %v2047_v49 }
 0x195   : > { %v2083_v16 = vsel %vm2067_vm9, %v2059_v8, %v2075_v13  ;;  %vm2068_vm11 = vcmp.ge.f32.partialorder %v2060_v39, 0.0  ;;  %v2076_v46 = vmul.f32 0.2, %v2060_v39  ;;  %2096 = vst [vmem:[%s3745_s28 + $0x38] sm:$0xff] %v2088_v15  ;;  %v2058_v17 = vadd.f32 %v2469_v43, %v2043_v14 }
 0x196   : > { %2091 = vst [vmem:[%s3745_s28 + $0x10] sm:$0xff] %v2083_v16  ;;  %v2081_v18 = vsel %vm2065_vm10, %v2057_v4, %v2073_v60  ;;  %vm2070_vm12 = vcmp.ge.f32.partialorder %v2062_v22, 0.0  ;;  %v2078_v42 = vmul.f32 0.2, %v2062_v22 }
 0x197   : > { %2089 = vst [vmem:[%s3745_s28] sm:$0xff] %v2081_v18  ;;  %v2084_v19 = vsel %vm2068_vm11, %v2060_v39, %v2076_v46  ;;  %vm2066_vm13 = vcmp.ge.f32.partialorder %v2058_v17, 0.0  ;;  %v2074_v20 = vmul.f32 0.2, %v2058_v17 }
 0x198   : > { %2092 = vst [vmem:[%s3745_s28 + $0x18] sm:$0xff] %v2084_v19  ;;  %v2086_v21 = vsel %vm2070_vm12, %v2062_v22, %v2078_v42 }
 0x199   : > { %v2082_v25 = vsel %vm2066_vm13, %v2058_v17, %v2074_v20  ;;  %2094 = vst [vmem:[%s3745_s28 + $0x28] sm:$0xff] %v2086_v21 }
 0x19a   : > { %2090 = vst [vmem:[%s3745_s28 + $0x8] sm:$0xff] %v2082_v25 }
 0x19b   : > { %3044 = shalt.err (!%p3041_p7)
}
 0x19c   : > { %s3045_s22 = scalar_lea.hbm %s3757_s11, 1024  ;;  %s3049_s18 = scalar_lea.hbm %s3825_s7, 10240 }
 0x19d   : > { %p3046_p9 = scmp.ne.s32.totalorder %s3757_s11, %s3045_s22  ;;  %p3050_p12 = scmp.lt.u32.totalorder %s3757_s11, %s3825_s7 }
 0x19e   : > { %p3051_p13 = scmp.lt.u32.totalorder %s3049_s18, %s3045_s22  ;;  %p3053_p1 = scmp.lt.u32.totalorder %s3045_s22, %s3757_s11 }
 0x19f   : > { %p3047_p10 = pnand %p3046_p9, %p3222_p3 }
 0x1a0   : > { %p3052_p0 = por %p3051_p13, %p3050_p12 }
 0x1a1   : > { %p3048_p11 = pneg %p3047_p10 }
 0x1a2   : > { %p3054_p2 = por %p3053_p1, %p3052_p0 }
 0x1a4   : > { %p3055_p4 = pnand %p3054_p2, %p3048_p11 }
 0x1a6   : > { %3058 = shalt.err (!%p3055_p4)
}
 0x1a7   : > { %s3129_s27 = smov 128   ;;  %s3130_s30 = smov 8  }
 0x1a8   : > { %2883 = dma.vmem_to_hbm [thread:$0]  (%p3222_p3), %s3759_s20, 1024, %s3757_s11, %s3766_s9, %s3129_s27, %s3129_s27, %s3130_s30  }
 0x1a9 PF: > { %p2889_p5 = scmp.ge.s32.totalorder %s3125_s8, 2  ;;  %s2128_s23 = sand.u32 1, %s3097_s24  }
 0x1aa   : > { %s2129_s17 = scalar_lea.sflag [#allocation3], %s2128_s23 }
 0x1ab   : > { %p2886_p6 = pnand %p2889_p5, %p3231_p8 }
 0x1ad   : > { %3092 = dma.done.wait (!%p2886_p6), %s2129_s17, 1024  }
 0x1ae   : > { %3094 = vsyncadd (!%p2886_p6), %s2129_s17, 4294966272  ;;  %s20_s8 = sadd.s32 1, %s3125_s8   ;;  %s3836_s27 = sld [smem:[#allocation5_spill]] }
 0x1af   : > { %p17_p7 = scmp.ge.s32.totalorder %s20_s8, 12   ;;  %s3837_s28 = sld [smem:[#allocation6_spill]] }
 0x1b0   : > { %s3838_s29 = sld [smem:[#allocation7_spill]]  ;;  %s3839_s30 = sld [smem:[#allocation8_spill]] }
 0x1b1   : > { %s3840_s24 = smov %s3101_s25  ;;  %s3841_s25 = smov %s3105_s26 }
 0x1b2   : > { %s3842_s26 = smov %s3240_s19  ;;  %19 = sbr.rel (!%p17_p7) target bundleno = 5 (0x5), region = 100 }
 0x1b9   :  { %2134 = vsyncpa [#allocation3], 1 }
 0x1ba   :  { %2136 = vsyncpa [#allocation3 + $0x1], 1 }

</bundles_post_ra>
